<compile_context>
chip_gen: v7x
topology: tpu7x:2x2x1
jax: 0.10.0
libtpu: 0.0.40
codegen_flags: <defaults>
</compile_context>

<pallas_src>
import jax
import jax.numpy as jnp
from jax.experimental import pallas as pl
from jax.experimental.pallas import tpu as pltpu


def _round_up(x, m):
    return ((x + m - 1) // m) * m


def _ceil_div(a, b):
    return -(-a // b)


# ---------------------------------------------------------------------------
# Kernel 1: embedding row-gather (manual DMA from HBM) + single LSTM cell step
#           with a single fused gate matmul.
# ---------------------------------------------------------------------------
def lstm_cell_kernel(ids_ref, emb_hbm_ref, w_ref, b_ref, h_ref, c_ref,
                     h_out_ref, c_out_ref,
                     x_ref, sem_ref):
    B_pad = x_ref.shape[0]
    E_pad = emb_hbm_ref.shape[1]
    H_pad = h_ref.shape[1]

    # ---- 1) launch the B_pad embedding row gathers (each (1, E_pad) from HBM)
    copies = []
    for b in range(B_pad):                       # B_pad is small & static
        tok = ids_ref[b]                         # scalar read from SMEM
        cp = pltpu.make_async_copy(
            emb_hbm_ref.at[pl.ds(tok, 1), :],    # one embedding row in HBM
            x_ref.at[pl.ds(b, 1), pl.ds(0, E_pad)],
            sem_ref.at[b])
        cp.start()
        copies.append(cp)

    # ---- 2) independent work while the latency-bound gathers are in flight:
    #         place h_prev into the recurrent columns of the fused matmul LHS.
    x_ref[:, E_pad:E_pad + H_pad] = h_ref[...].astype(x_ref.dtype)
    c_prev = c_ref[...]                          # (B_pad, H_pad) f32

    # ---- 3) wait, then ONE fused MXU pass over [embedded | h_prev] ----------
    for cp in copies:
        cp.wait()
    gates = (jnp.dot(x_ref[...], w_ref[...],
                     preferred_element_type=jnp.float32)
             + b_ref[...])                       # (B_pad, 4*H_pad) f32

    # ---- 4) per-gate activations (PyTorch order i, f, g, o) -----------------
    i_g = jax.nn.sigmoid(gates[:, 0 * H_pad:1 * H_pad])
    g_g = jnp.tanh(gates[:, 2 * H_pad:3 * H_pad])
    c_new = i_g * g_g
    f_g = jax.nn.sigmoid(gates[:, 1 * H_pad:2 * H_pad])
    c_new = c_new + f_g * c_prev                 # padding cols stay exactly 0
    o_g = jax.nn.sigmoid(gates[:, 3 * H_pad:4 * H_pad])
    c_out_ref[...] = c_new
    h_out_ref[...] = o_g * jnp.tanh(c_new)


# ---------------------------------------------------------------------------
# Kernel 2: output projection, tiled over the vocab dimension (lane-dense).
# ---------------------------------------------------------------------------
def proj_kernel(h_ref, w_out_ref, b_out_ref, out_ref):
    out_ref[...] = (jnp.dot(h_ref[...].astype(w_out_ref.dtype), w_out_ref[...],
                            preferred_element_type=jnp.float32)
                    + b_out_ref[...])


# ---------------------------------------------------------------------------
# Parameter handling
# ---------------------------------------------------------------------------
def init_raw_params(key, output_dim, emb_dim, hidden_dim, pad_idx=0):
    """Unpadded params with the PyTorch module's math (already pre-transposed)."""
    k_emb, k_wih, k_whh, k_bih, k_bhh, k_wo, k_bo = jax.random.split(key, 7)
    scale = 0.1
    emb = scale * jax.random.normal(k_emb, (output_dim, emb_dim), jnp.float32)
    emb = emb.at[pad_idx].set(0.0)                      # padding_idx row is zero
    w_ih = scale * jax.random.normal(k_wih, (emb_dim, 4 * hidden_dim), jnp.float32)
    w_hh = scale * jax.random.normal(k_whh, (hidden_dim, 4 * hidden_dim), jnp.float32)
    b_ih = scale * jax.random.normal(k_bih, (1, 4 * hidden_dim), jnp.float32)
    b_hh = scale * jax.random.normal(k_bhh, (1, 4 * hidden_dim), jnp.float32)
    w_out = scale * jax.random.normal(k_wo, (hidden_dim, output_dim), jnp.float32)
    b_out = scale * jax.random.normal(k_bo, (1, output_dim), jnp.float32)
    return {"emb": emb, "w_ih": w_ih, "w_hh": w_hh, "b": b_ih + b_hh,
            "w_out": w_out, "b_out": b_out}


def pad_params(raw, *, tile_v_max=1024, weight_dtype=jnp.float32):
    """Pad/lay out params for the kernels.

    weight_dtype=jnp.bfloat16 halves the weight HBM stream on v5e/v6e/v7x
    (everything here is HBM-byte-bound at small batch); f32 accumulation and
    f32 state are kept regardless.
    """
    emb, w_ih, w_hh, b = raw["emb"], raw["w_ih"], raw["w_hh"], raw["b"]
    w_out, b_out = raw["w_out"], raw["b_out"]
    V, E = emb.shape
    H = w_hh.shape[0]

    E_pad = _round_up(E, 128)
    H_pad = _round_up(H, 128)

    # Vocab tiling: lane-dense multiples of 128; when more than one tile is
    # needed, force an even tile count so v7x's two TensorCores both get work.
    V128 = _round_up(V, 128)
    if V128 <= tile_v_max:
        tile_v, n_tiles = V128, 1
    else:
        n_tiles = _ceil_div(V128, tile_v_max)
        if n_tiles % 2:
            n_tiles += 1
        tile_v = _round_up(_ceil_div(V128, n_tiles), 128)
    V_pad = n_tiles * tile_v

    # Embedding table stays in HBM; only pad the feature dim.
    emb_p = jnp.zeros((V, E_pad), weight_dtype).at[:, :E].set(emb.astype(weight_dtype))

    # Fused gate weight: rows [0:E] = w_ih, rows [E_pad:E_pad+H] = w_hh.
    # Each gate block k lives at lane-aligned columns [k*H_pad, k*H_pad+H).
    w_fused = jnp.zeros((E_pad + H_pad, 4 * H_pad), weight_dtype)
    b_p = jnp.zeros((1, 4 * H_pad), jnp.float32)
    for k in range(4):
        w_fused = w_fused.at[:E, k * H_pad:k * H_pad + H].set(
            w_ih[:, k * H:(k + 1) * H].astype(weight_dtype))
        w_fused = w_fused.at[E_pad:E_pad + H, k * H_pad:k * H_pad + H].set(
            w_hh[:, k * H:(k + 1) * H].astype(weight_dtype))
        b_p = b_p.at[:, k * H_pad:k * H_pad + H].set(b[:, k * H:(k + 1) * H])

    w_out_p = jnp.zeros((H_pad, V_pad), weight_dtype).at[:H, :V].set(
        w_out.astype(weight_dtype))
    b_out_p = jnp.zeros((1, V_pad), jnp.float32).at[:, :V].set(b_out)

    # TODO(synk): int8 w_out (per-column scales) on v6e / fp8 on v7x for a
    # further 2-4x cut of the projection weight stream.
    return {"emb": emb_p, "w": w_fused, "b": b_p,
            "w_out": w_out_p, "b_out": b_out_p,
            "dims": (V, E, H), "tile_v": tile_v}


# ---------------------------------------------------------------------------
# Forward wrapper (mirrors Decoder.forward for num_layers=1, rnn_type='lstm')
# ---------------------------------------------------------------------------
def decoder_forward(kparams, token_ids, hidden):
    """token_ids: (B,) int32; hidden: (h, c) each (1, B, H).
    Returns logits (B, V) and updated (h, c) each (1, B, H)."""
    h0, c0 = hidden
    B = token_ids.shape[0]
    V, E, H = kparams["dims"]
    E_pad = kparams["emb"].shape[1]
    H_pad = kparams["w"].shape[0] - E_pad
    V_pad = kparams["w_out"].shape[1]
    tile_v = kparams["tile_v"]
    B_pad = _round_up(max(B, 8), 8)
    w_bytes = jnp.dtype(kparams["w"].dtype).itemsize

    # Clamp ids so an out-of-range token can never drive an OOB DMA.
    ids = jnp.zeros((B_pad,), jnp.int32).at[:B].set(
        jnp.clip(token_ids.astype(jnp.int32), 0, V - 1))
    h = jnp.zeros((B_pad, H_pad), jnp.float32).at[:B, :H].set(h0.reshape(B, H))
    c = jnp.zeros((B_pad, H_pad), jnp.float32).at[:B, :H].set(c0.reshape(B, H))

    vmem = pl.BlockSpec(memory_space=pltpu.MemorySpace.VMEM)
    smem = pl.BlockSpec(memory_space=pltpu.MemorySpace.SMEM)
    hbm = pl.BlockSpec(memory_space=pl.ANY)

    # ---- call 1: DMA row-gather + fused-gate LSTM cell ----------------------
    bytes1 = ((E_pad + H_pad) * 4 * H_pad * w_bytes        # fused gate weight
              + 4 * H_pad * 4                              # bias
              + 4 * B_pad * H_pad * 4                      # h, c in + h, c out
              + B_pad * (E_pad + H_pad) * w_bytes)         # matmul LHS scratch
    vmem_limit1 = min(int(bytes1 * 1.5) + (2 << 20), 64 << 20)

    h_new, c_new = pl.pallas_call(
        lstm_cell_kernel,
        out_shape=(jax.ShapeDtypeStruct((B_pad, H_pad), jnp.float32),
                   jax.ShapeDtypeStruct((B_pad, H_pad), jnp.float32)),
        in_specs=[smem, hbm, vmem, vmem, vmem, vmem],
        out_specs=(vmem, vmem),
        scratch_shapes=[pltpu.VMEM((B_pad, E_pad + H_pad), kparams["emb"].dtype),
                        pltpu.SemaphoreType.DMA((B_pad,))],
        compiler_params=pltpu.CompilerParams(vmem_limit_bytes=vmem_limit1),
    )(ids, kparams["emb"], kparams["w"], kparams["b"], h, c)

    # ---- call 2: logits projection, tiled over V (parallel across TCs) ------
    n_tiles = V_pad // tile_v
    bytes2 = 2 * (B_pad * H_pad * 4            # h block (double-buffered)
                  + H_pad * tile_v * w_bytes   # weight tile
                  + tile_v * 4                 # bias tile
                  + B_pad * tile_v * 4)        # output tile
    vmem_limit2 = min(int(bytes2 * 1.5) + (2 << 20), 64 << 20)

    logits_p = pl.pallas_call(
        proj_kernel,
        out_shape=jax.ShapeDtypeStruct((B_pad, V_pad), jnp.float32),
        grid=(n_tiles,),
        in_specs=[pl.BlockSpec((B_pad, H_pad), lambda j: (0, 0)),
                  pl.BlockSpec((H_pad, tile_v), lambda j: (0, j)),
                  pl.BlockSpec((1, tile_v), lambda j: (0, j))],
        out_specs=pl.BlockSpec((B_pad, tile_v), lambda j: (0, j)),
        compiler_params=pltpu.CompilerParams(
            dimension_semantics=("parallel",),
            vmem_limit_bytes=vmem_limit2),
    )(h_new, kparams["w_out"], kparams["b_out"])

    # TODO(synk): for autoregressive decode loops, fuse T steps into one
    # pallas_call (grid over time, constant index_map so the fused LSTM weight
    # is fetched once, h/c carried in VMEM scratch / input_output_aliases,
    # per-step ids via scalar prefetch) to amortize weight streaming + launches.
    # TODO(synk): rnn_type 'rnn'/'gru', num_layers>1 and inter-layer dropout are
    # not implemented; this covers the module default (single-layer LSTM).

    logits = logits_p[:B, :V]
    h_out = h_new[:B, :H].reshape(1, B, H)
    c_out = c_new[:B, :H].reshape(1, B, H)
    return logits, (h_out, c_out)


# ---------------------------------------------------------------------------
# Pure-JAX reference (same math as the PyTorch module) for validation.
# ---------------------------------------------------------------------------
def reference_forward(raw, token_ids, hidden):
    h0, c0 = hidden
    B = token_ids.shape[0]
    H = h0.shape[-1]
    embedded = raw["emb"][token_ids]                          # (B, E)
    gates = embedded @ raw["w_ih"] + h0.reshape(B, H) @ raw["w_hh"] + raw["b"]
    i_g = jax.nn.sigmoid(gates[:, 0 * H:1 * H])
    f_g = jax.nn.sigmoid(gates[:, 1 * H:2 * H])
    g_g = jnp.tanh(gates[:, 2 * H:3 * H])
    o_g = jax.nn.sigmoid(gates[:, 3 * H:4 * H])
    c_new = f_g * c0.reshape(B, H) + i_g * g_g
    h_new = o_g * jnp.tanh(c_new)
    logits = h_new @ raw["w_out"] + raw["b_out"]
    return logits, (h_new.reshape(1, B, H), c_new.reshape(1, B, H))


if __name__ == "__main__":
    # Small shapes consistent with the module's forward:
    #   input: (batch,) token ids; hidden: (h, c) each (num_layers=1, batch, hidden)
    B, V, E, H = 4, 16, 8, 32

    key = jax.random.PRNGKey(0)
    k_params, k_ids, k_h, k_c = jax.random.split(key, 4)

    raw = init_raw_params(k_params, output_dim=V, emb_dim=E, hidden_dim=H, pad_idx=0)
    kparams = pad_params(raw)   # weight_dtype=jnp.bfloat16 for v6e/v7x production

    token_ids = jax.random.randint(k_ids, (B,), 0, V, dtype=jnp.int32)
    h0 = 0.1 * jax.random.normal(k_h, (1, B, H), jnp.float32)
    c0 = 0.1 * jax.random.normal(k_c, (1, B, H), jnp.float32)

    logits, (h_new, c_new) = decoder_forward(kparams, token_ids, (h0, c0))
    jax.block_until_ready((logits, h_new, c_new))

    ref_logits, (ref_h, ref_c) = reference_forward(raw, token_ids, (h0, c0))
    assert logits.shape == (B, V)
    assert h_new.shape == (1, B, H) and c_new.shape == (1, B, H)
    assert jnp.allclose(logits, ref_logits, atol=1e-4)
    assert jnp.allclose(h_new, ref_h, atol=1e-4)
    assert jnp.allclose(c_new, ref_c, atol=1e-4)

    print("KERNEL_OK")
</pallas_src>

<mosaic_0001>
module attributes {stable_mosaic.version = 11 : i64} {
  func.func @lstm_cell_kernel(%arg0: memref<8xi32, #tpu.memory_space<smem>>, %arg1: memref<16x128xf32, #tpu.memory_space<any>>, %arg2: memref<256x512xf32, #tpu.memory_space<vmem>>, %arg3: memref<1x512xf32, #tpu.memory_space<vmem>>, %arg4: memref<8x128xf32, #tpu.memory_space<vmem>>, %arg5: memref<8x128xf32, #tpu.memory_space<vmem>>, %arg6: memref<8x128xf32, #tpu.memory_space<vmem>>, %arg7: memref<8x128xf32, #tpu.memory_space<vmem>>, %arg8: memref<8x256xf32, #tpu.memory_space<vmem>>, %arg9: memref<8x!tpu.dma_semaphore, #tpu.memory_space<semaphore_mem>>) attributes {dimension_semantics = [], scalar_prefetch = 0 : i64, scratch_operands = 2 : i64, tpu.core_type = #tpu.core_type<tc>} {
    %c0 = arith.constant 0 : index
    %0 = memref.load %arg0[%c0] : memref<8xi32, #tpu.memory_space<smem>>
    %c0_i32 = arith.constant 0 : i32
    %c0_i32_0 = arith.constant 0 : i32
    %1 = tpu.memref_slice %arg1[%0, %c0_i32_0] : memref<16x128xf32, #tpu.memory_space<any>> -> memref<1x128xf32, #tpu.memory_space<any>>
    %c0_i32_1 = arith.constant 0 : i32
    %c0_i32_2 = arith.constant 0 : i32
    %2 = tpu.memref_slice %arg8[%c0_i32_1, %c0_i32_2] : memref<8x256xf32, #tpu.memory_space<vmem>> -> memref<1x128xf32, #tpu.memory_space<vmem>>
    %3 = tpu.memref_slice %arg9[%c0_i32] : memref<8x!tpu.dma_semaphore, #tpu.memory_space<semaphore_mem>> -> memref<1x!tpu.dma_semaphore, #tpu.memory_space<semaphore_mem>>
    %4 = tpu.memref_squeeze %3 : memref<1x!tpu.dma_semaphore, #tpu.memory_space<semaphore_mem>> -> memref<!tpu.dma_semaphore, #tpu.memory_space<semaphore_mem>>
    tpu.enqueue_dma source(%1 : memref<1x128xf32, #tpu.memory_space<any>>) target(%2 : memref<1x128xf32, #tpu.memory_space<vmem>>) target_semaphore(%4 : memref<!tpu.dma_semaphore, #tpu.memory_space<semaphore_mem>>)
    %c1 = arith.constant 1 : index
    %5 = memref.load %arg0[%c1] : memref<8xi32, #tpu.memory_space<smem>>
    %c1_i32 = arith.constant 1 : i32
    %c0_i32_3 = arith.constant 0 : i32
    %6 = tpu.memref_slice %arg1[%5, %c0_i32_3] : memref<16x128xf32, #tpu.memory_space<any>> -> memref<1x128xf32, #tpu.memory_space<any>>
    %c1_i32_4 = arith.constant 1 : i32
    %c0_i32_5 = arith.constant 0 : i32
    %7 = tpu.memref_slice %arg8[%c1_i32_4, %c0_i32_5] : memref<8x256xf32, #tpu.memory_space<vmem>> -> memref<1x128xf32, #tpu.memory_space<vmem>>
    %8 = tpu.memref_slice %arg9[%c1_i32] : memref<8x!tpu.dma_semaphore, #tpu.memory_space<semaphore_mem>> -> memref<1x!tpu.dma_semaphore, #tpu.memory_space<semaphore_mem>>
    %9 = tpu.memref_squeeze %8 : memref<1x!tpu.dma_semaphore, #tpu.memory_space<semaphore_mem>> -> memref<!tpu.dma_semaphore, #tpu.memory_space<semaphore_mem>>
    tpu.enqueue_dma source(%6 : memref<1x128xf32, #tpu.memory_space<any>>) target(%7 : memref<1x128xf32, #tpu.memory_space<vmem>>) target_semaphore(%9 : memref<!tpu.dma_semaphore, #tpu.memory_space<semaphore_mem>>)
    %c2 = arith.constant 2 : index
    %10 = memref.load %arg0[%c2] : memref<8xi32, #tpu.memory_space<smem>>
    %c2_i32 = arith.constant 2 : i32
    %c0_i32_6 = arith.constant 0 : i32
    %11 = tpu.memref_slice %arg1[%10, %c0_i32_6] : memref<16x128xf32, #tpu.memory_space<any>> -> memref<1x128xf32, #tpu.memory_space<any>>
    %c2_i32_7 = arith.constant 2 : i32
    %c0_i32_8 = arith.constant 0 : i32
    %12 = tpu.memref_slice %arg8[%c2_i32_7, %c0_i32_8] : memref<8x256xf32, #tpu.memory_space<vmem>> -> memref<1x128xf32, #tpu.memory_space<vmem>>
    %13 = tpu.memref_slice %arg9[%c2_i32] : memref<8x!tpu.dma_semaphore, #tpu.memory_space<semaphore_mem>> -> memref<1x!tpu.dma_semaphore, #tpu.memory_space<semaphore_mem>>
    %14 = tpu.memref_squeeze %13 : memref<1x!tpu.dma_semaphore, #tpu.memory_space<semaphore_mem>> -> memref<!tpu.dma_semaphore, #tpu.memory_space<semaphore_mem>>
    tpu.enqueue_dma source(%11 : memref<1x128xf32, #tpu.memory_space<any>>) target(%12 : memref<1x128xf32, #tpu.memory_space<vmem>>) target_semaphore(%14 : memref<!tpu.dma_semaphore, #tpu.memory_space<semaphore_mem>>)
    %c3 = arith.constant 3 : index
    %15 = memref.load %arg0[%c3] : memref<8xi32, #tpu.memory_space<smem>>
    %c3_i32 = arith.constant 3 : i32
    %c0_i32_9 = arith.constant 0 : i32
    %16 = tpu.memref_slice %arg1[%15, %c0_i32_9] : memref<16x128xf32, #tpu.memory_space<any>> -> memref<1x128xf32, #tpu.memory_space<any>>
    %c3_i32_10 = arith.constant 3 : i32
    %c0_i32_11 = arith.constant 0 : i32
    %17 = tpu.memref_slice %arg8[%c3_i32_10, %c0_i32_11] : memref<8x256xf32, #tpu.memory_space<vmem>> -> memref<1x128xf32, #tpu.memory_space<vmem>>
    %18 = tpu.memref_slice %arg9[%c3_i32] : memref<8x!tpu.dma_semaphore, #tpu.memory_space<semaphore_mem>> -> memref<1x!tpu.dma_semaphore, #tpu.memory_space<semaphore_mem>>
    %19 = tpu.memref_squeeze %18 : memref<1x!tpu.dma_semaphore, #tpu.memory_space<semaphore_mem>> -> memref<!tpu.dma_semaphore, #tpu.memory_space<semaphore_mem>>
    tpu.enqueue_dma source(%16 : memref<1x128xf32, #tpu.memory_space<any>>) target(%17 : memref<1x128xf32, #tpu.memory_space<vmem>>) target_semaphore(%19 : memref<!tpu.dma_semaphore, #tpu.memory_space<semaphore_mem>>)
    %c4 = arith.constant 4 : index
    %20 = memref.load %arg0[%c4] : memref<8xi32, #tpu.memory_space<smem>>
    %c4_i32 = arith.constant 4 : i32
    %c0_i32_12 = arith.constant 0 : i32
    %21 = tpu.memref_slice %arg1[%20, %c0_i32_12] : memref<16x128xf32, #tpu.memory_space<any>> -> memref<1x128xf32, #tpu.memory_space<any>>
    %c4_i32_13 = arith.constant 4 : i32
    %c0_i32_14 = arith.constant 0 : i32
    %22 = tpu.memref_slice %arg8[%c4_i32_13, %c0_i32_14] : memref<8x256xf32, #tpu.memory_space<vmem>> -> memref<1x128xf32, #tpu.memory_space<vmem>>
    %23 = tpu.memref_slice %arg9[%c4_i32] : memref<8x!tpu.dma_semaphore, #tpu.memory_space<semaphore_mem>> -> memref<1x!tpu.dma_semaphore, #tpu.memory_space<semaphore_mem>>
    %24 = tpu.memref_squeeze %23 : memref<1x!tpu.dma_semaphore, #tpu.memory_space<semaphore_mem>> -> memref<!tpu.dma_semaphore, #tpu.memory_space<semaphore_mem>>
    tpu.enqueue_dma source(%21 : memref<1x128xf32, #tpu.memory_space<any>>) target(%22 : memref<1x128xf32, #tpu.memory_space<vmem>>) target_semaphore(%24 : memref<!tpu.dma_semaphore, #tpu.memory_space<semaphore_mem>>)
    %c5 = arith.constant 5 : index
    %25 = memref.load %arg0[%c5] : memref<8xi32, #tpu.memory_space<smem>>
    %c5_i32 = arith.constant 5 : i32
    %c0_i32_15 = arith.constant 0 : i32
    %26 = tpu.memref_slice %arg1[%25, %c0_i32_15] : memref<16x128xf32, #tpu.memory_space<any>> -> memref<1x128xf32, #tpu.memory_space<any>>
    %c5_i32_16 = arith.constant 5 : i32
    %c0_i32_17 = arith.constant 0 : i32
    %27 = tpu.memref_slice %arg8[%c5_i32_16, %c0_i32_17] : memref<8x256xf32, #tpu.memory_space<vmem>> -> memref<1x128xf32, #tpu.memory_space<vmem>>
    %28 = tpu.memref_slice %arg9[%c5_i32] : memref<8x!tpu.dma_semaphore, #tpu.memory_space<semaphore_mem>> -> memref<1x!tpu.dma_semaphore, #tpu.memory_space<semaphore_mem>>
    %29 = tpu.memref_squeeze %28 : memref<1x!tpu.dma_semaphore, #tpu.memory_space<semaphore_mem>> -> memref<!tpu.dma_semaphore, #tpu.memory_space<semaphore_mem>>
    tpu.enqueue_dma source(%26 : memref<1x128xf32, #tpu.memory_space<any>>) target(%27 : memref<1x128xf32, #tpu.memory_space<vmem>>) target_semaphore(%29 : memref<!tpu.dma_semaphore, #tpu.memory_space<semaphore_mem>>)
    %c6 = arith.constant 6 : index
    %30 = memref.load %arg0[%c6] : memref<8xi32, #tpu.memory_space<smem>>
    %c6_i32 = arith.constant 6 : i32
    %c0_i32_18 = arith.constant 0 : i32
    %31 = tpu.memref_slice %arg1[%30, %c0_i32_18] : memref<16x128xf32, #tpu.memory_space<any>> -> memref<1x128xf32, #tpu.memory_space<any>>
    %c6_i32_19 = arith.constant 6 : i32
    %c0_i32_20 = arith.constant 0 : i32
    %32 = tpu.memref_slice %arg8[%c6_i32_19, %c0_i32_20] : memref<8x256xf32, #tpu.memory_space<vmem>> -> memref<1x128xf32, #tpu.memory_space<vmem>>
    %33 = tpu.memref_slice %arg9[%c6_i32] : memref<8x!tpu.dma_semaphore, #tpu.memory_space<semaphore_mem>> -> memref<1x!tpu.dma_semaphore, #tpu.memory_space<semaphore_mem>>
    %34 = tpu.memref_squeeze %33 : memref<1x!tpu.dma_semaphore, #tpu.memory_space<semaphore_mem>> -> memref<!tpu.dma_semaphore, #tpu.memory_space<semaphore_mem>>
    tpu.enqueue_dma source(%31 : memref<1x128xf32, #tpu.memory_space<any>>) target(%32 : memref<1x128xf32, #tpu.memory_space<vmem>>) target_semaphore(%34 : memref<!tpu.dma_semaphore, #tpu.memory_space<semaphore_mem>>)
    %c7 = arith.constant 7 : index
    %35 = memref.load %arg0[%c7] : memref<8xi32, #tpu.memory_space<smem>>
    %c7_i32 = arith.constant 7 : i32
    %c0_i32_21 = arith.constant 0 : i32
    %36 = tpu.memref_slice %arg1[%35, %c0_i32_21] : memref<16x128xf32, #tpu.memory_space<any>> -> memref<1x128xf32, #tpu.memory_space<any>>
    %c7_i32_22 = arith.constant 7 : i32
    %c0_i32_23 = arith.constant 0 : i32
    %37 = tpu.memref_slice %arg8[%c7_i32_22, %c0_i32_23] : memref<8x256xf32, #tpu.memory_space<vmem>> -> memref<1x128xf32, #tpu.memory_space<vmem>>
    %38 = tpu.memref_slice %arg9[%c7_i32] : memref<8x!tpu.dma_semaphore, #tpu.memory_space<semaphore_mem>> -> memref<1x!tpu.dma_semaphore, #tpu.memory_space<semaphore_mem>>
    %39 = tpu.memref_squeeze %38 : memref<1x!tpu.dma_semaphore, #tpu.memory_space<semaphore_mem>> -> memref<!tpu.dma_semaphore, #tpu.memory_space<semaphore_mem>>
    tpu.enqueue_dma source(%36 : memref<1x128xf32, #tpu.memory_space<any>>) target(%37 : memref<1x128xf32, #tpu.memory_space<vmem>>) target_semaphore(%39 : memref<!tpu.dma_semaphore, #tpu.memory_space<semaphore_mem>>)
    %c0_24 = arith.constant 0 : index
    %c0_25 = arith.constant 0 : index
    %40 = vector.load %arg4[%c0_24, %c0_25] : memref<8x128xf32, #tpu.memory_space<vmem>>, vector<8x128xf32>
    %c0_26 = arith.constant 0 : index
    %c128 = arith.constant 128 : index
    %41 = vector.load %arg8[%c0_26, %c128] : memref<8x256xf32, #tpu.memory_space<vmem>>, vector<8x128xf32>
    tpu.vector_store %arg8[%c0_26, %c128], %40 {strides = array<i32>} : memref<8x256xf32, #tpu.memory_space<vmem>>, vector<8x128xf32>,
    %c0_27 = arith.constant 0 : index
    %c0_28 = arith.constant 0 : index
    %42 = vector.load %arg5[%c0_27, %c0_28] : memref<8x128xf32, #tpu.memory_space<vmem>>, vector<8x128xf32>
    %c0_i32_29 = arith.constant 0 : i32
    %c0_i32_30 = arith.constant 0 : i32
    %43 = tpu.memref_slice %arg1[%0, %c0_i32_30] : memref<16x128xf32, #tpu.memory_space<any>> -> memref<1x128xf32, #tpu.memory_space<any>>
    %c0_i32_31 = arith.constant 0 : i32
    %c0_i32_32 = arith.constant 0 : i32
    %44 = tpu.memref_slice %arg8[%c0_i32_31, %c0_i32_32] : memref<8x256xf32, #tpu.memory_space<vmem>> -> memref<1x128xf32, #tpu.memory_space<vmem>>
    %45 = tpu.memref_slice %arg9[%c0_i32_29] : memref<8x!tpu.dma_semaphore, #tpu.memory_space<semaphore_mem>> -> memref<1x!tpu.dma_semaphore, #tpu.memory_space<semaphore_mem>>
    %46 = tpu.memref_squeeze %45 : memref<1x!tpu.dma_semaphore, #tpu.memory_space<semaphore_mem>> -> memref<!tpu.dma_semaphore, #tpu.memory_space<semaphore_mem>>
    tpu.wait_dma2 semaphore(%46 : memref<!tpu.dma_semaphore, #tpu.memory_space<semaphore_mem>>) src(%43 : memref<1x128xf32, #tpu.memory_space<any>>) dst(%44 : memref<1x128xf32, #tpu.memory_space<vmem>>)
    %c1_i32_33 = arith.constant 1 : i32
    %c0_i32_34 = arith.constant 0 : i32
    %47 = tpu.memref_slice %arg1[%5, %c0_i32_34] : memref<16x128xf32, #tpu.memory_space<any>> -> memref<1x128xf32, #tpu.memory_space<any>>
    %c1_i32_35 = arith.constant 1 : i32
    %c0_i32_36 = arith.constant 0 : i32
    %48 = tpu.memref_slice %arg8[%c1_i32_35, %c0_i32_36] : memref<8x256xf32, #tpu.memory_space<vmem>> -> memref<1x128xf32, #tpu.memory_space<vmem>>
    %49 = tpu.memref_slice %arg9[%c1_i32_33] : memref<8x!tpu.dma_semaphore, #tpu.memory_space<semaphore_mem>> -> memref<1x!tpu.dma_semaphore, #tpu.memory_space<semaphore_mem>>
    %50 = tpu.memref_squeeze %49 : memref<1x!tpu.dma_semaphore, #tpu.memory_space<semaphore_mem>> -> memref<!tpu.dma_semaphore, #tpu.memory_space<semaphore_mem>>
    tpu.wait_dma2 semaphore(%50 : memref<!tpu.dma_semaphore, #tpu.memory_space<semaphore_mem>>) src(%47 : memref<1x128xf32, #tpu.memory_space<any>>) dst(%48 : memref<1x128xf32, #tpu.memory_space<vmem>>)
    %c2_i32_37 = arith.constant 2 : i32
    %c0_i32_38 = arith.constant 0 : i32
    %51 = tpu.memref_slice %arg1[%10, %c0_i32_38] : memref<16x128xf32, #tpu.memory_space<any>> -> memref<1x128xf32, #tpu.memory_space<any>>
    %c2_i32_39 = arith.constant 2 : i32
    %c0_i32_40 = arith.constant 0 : i32
    %52 = tpu.memref_slice %arg8[%c2_i32_39, %c0_i32_40] : memref<8x256xf32, #tpu.memory_space<vmem>> -> memref<1x128xf32, #tpu.memory_space<vmem>>
    %53 = tpu.memref_slice %arg9[%c2_i32_37] : memref<8x!tpu.dma_semaphore, #tpu.memory_space<semaphore_mem>> -> memref<1x!tpu.dma_semaphore, #tpu.memory_space<semaphore_mem>>
    %54 = tpu.memref_squeeze %53 : memref<1x!tpu.dma_semaphore, #tpu.memory_space<semaphore_mem>> -> memref<!tpu.dma_semaphore, #tpu.memory_space<semaphore_mem>>
    tpu.wait_dma2 semaphore(%54 : memref<!tpu.dma_semaphore, #tpu.memory_space<semaphore_mem>>) src(%51 : memref<1x128xf32, #tpu.memory_space<any>>) dst(%52 : memref<1x128xf32, #tpu.memory_space<vmem>>)
    %c3_i32_41 = arith.constant 3 : i32
    %c0_i32_42 = arith.constant 0 : i32
    %55 = tpu.memref_slice %arg1[%15, %c0_i32_42] : memref<16x128xf32, #tpu.memory_space<any>> -> memref<1x128xf32, #tpu.memory_space<any>>
    %c3_i32_43 = arith.constant 3 : i32
    %c0_i32_44 = arith.constant 0 : i32
    %56 = tpu.memref_slice %arg8[%c3_i32_43, %c0_i32_44] : memref<8x256xf32, #tpu.memory_space<vmem>> -> memref<1x128xf32, #tpu.memory_space<vmem>>
    %57 = tpu.memref_slice %arg9[%c3_i32_41] : memref<8x!tpu.dma_semaphore, #tpu.memory_space<semaphore_mem>> -> memref<1x!tpu.dma_semaphore, #tpu.memory_space<semaphore_mem>>
    %58 = tpu.memref_squeeze %57 : memref<1x!tpu.dma_semaphore, #tpu.memory_space<semaphore_mem>> -> memref<!tpu.dma_semaphore, #tpu.memory_space<semaphore_mem>>
    tpu.wait_dma2 semaphore(%58 : memref<!tpu.dma_semaphore, #tpu.memory_space<semaphore_mem>>) src(%55 : memref<1x128xf32, #tpu.memory_space<any>>) dst(%56 : memref<1x128xf32, #tpu.memory_space<vmem>>)
    %c4_i32_45 = arith.constant 4 : i32
    %c0_i32_46 = arith.constant 0 : i32
    %59 = tpu.memref_slice %arg1[%20, %c0_i32_46] : memref<16x128xf32, #tpu.memory_space<any>> -> memref<1x128xf32, #tpu.memory_space<any>>
    %c4_i32_47 = arith.constant 4 : i32
    %c0_i32_48 = arith.constant 0 : i32
    %60 = tpu.memref_slice %arg8[%c4_i32_47, %c0_i32_48] : memref<8x256xf32, #tpu.memory_space<vmem>> -> memref<1x128xf32, #tpu.memory_space<vmem>>
    %61 = tpu.memref_slice %arg9[%c4_i32_45] : memref<8x!tpu.dma_semaphore, #tpu.memory_space<semaphore_mem>> -> memref<1x!tpu.dma_semaphore, #tpu.memory_space<semaphore_mem>>
    %62 = tpu.memref_squeeze %61 : memref<1x!tpu.dma_semaphore, #tpu.memory_space<semaphore_mem>> -> memref<!tpu.dma_semaphore, #tpu.memory_space<semaphore_mem>>
    tpu.wait_dma2 semaphore(%62 : memref<!tpu.dma_semaphore, #tpu.memory_space<semaphore_mem>>) src(%59 : memref<1x128xf32, #tpu.memory_space<any>>) dst(%60 : memref<1x128xf32, #tpu.memory_space<vmem>>)
    %c5_i32_49 = arith.constant 5 : i32
    %c0_i32_50 = arith.constant 0 : i32
    %63 = tpu.memref_slice %arg1[%25, %c0_i32_50] : memref<16x128xf32, #tpu.memory_space<any>> -> memref<1x128xf32, #tpu.memory_space<any>>
    %c5_i32_51 = arith.constant 5 : i32
    %c0_i32_52 = arith.constant 0 : i32
    %64 = tpu.memref_slice %arg8[%c5_i32_51, %c0_i32_52] : memref<8x256xf32, #tpu.memory_space<vmem>> -> memref<1x128xf32, #tpu.memory_space<vmem>>
    %65 = tpu.memref_slice %arg9[%c5_i32_49] : memref<8x!tpu.dma_semaphore, #tpu.memory_space<semaphore_mem>> -> memref<1x!tpu.dma_semaphore, #tpu.memory_space<semaphore_mem>>
    %66 = tpu.memref_squeeze %65 : memref<1x!tpu.dma_semaphore, #tpu.memory_space<semaphore_mem>> -> memref<!tpu.dma_semaphore, #tpu.memory_space<semaphore_mem>>
    tpu.wait_dma2 semaphore(%66 : memref<!tpu.dma_semaphore, #tpu.memory_space<semaphore_mem>>) src(%63 : memref<1x128xf32, #tpu.memory_space<any>>) dst(%64 : memref<1x128xf32, #tpu.memory_space<vmem>>)
    %c6_i32_53 = arith.constant 6 : i32
    %c0_i32_54 = arith.constant 0 : i32
    %67 = tpu.memref_slice %arg1[%30, %c0_i32_54] : memref<16x128xf32, #tpu.memory_space<any>> -> memref<1x128xf32, #tpu.memory_space<any>>
    %c6_i32_55 = arith.constant 6 : i32
    %c0_i32_56 = arith.constant 0 : i32
    %68 = tpu.memref_slice %arg8[%c6_i32_55, %c0_i32_56] : memref<8x256xf32, #tpu.memory_space<vmem>> -> memref<1x128xf32, #tpu.memory_space<vmem>>
    %69 = tpu.memref_slice %arg9[%c6_i32_53] : memref<8x!tpu.dma_semaphore, #tpu.memory_space<semaphore_mem>> -> memref<1x!tpu.dma_semaphore, #tpu.memory_space<semaphore_mem>>
    %70 = tpu.memref_squeeze %69 : memref<1x!tpu.dma_semaphore, #tpu.memory_space<semaphore_mem>> -> memref<!tpu.dma_semaphore, #tpu.memory_space<semaphore_mem>>
    tpu.wait_dma2 semaphore(%70 : memref<!tpu.dma_semaphore, #tpu.memory_space<semaphore_mem>>) src(%67 : memref<1x128xf32, #tpu.memory_space<any>>) dst(%68 : memref<1x128xf32, #tpu.memory_space<vmem>>)
    %c7_i32_57 = arith.constant 7 : i32
    %c0_i32_58 = arith.constant 0 : i32
    %71 = tpu.memref_slice %arg1[%35, %c0_i32_58] : memref<16x128xf32, #tpu.memory_space<any>> -> memref<1x128xf32, #tpu.memory_space<any>>
    %c7_i32_59 = arith.constant 7 : i32
    %c0_i32_60 = arith.constant 0 : i32
    %72 = tpu.memref_slice %arg8[%c7_i32_59, %c0_i32_60] : memref<8x256xf32, #tpu.memory_space<vmem>> -> memref<1x128xf32, #tpu.memory_space<vmem>>
    %73 = tpu.memref_slice %arg9[%c7_i32_57] : memref<8x!tpu.dma_semaphore, #tpu.memory_space<semaphore_mem>> -> memref<1x!tpu.dma_semaphore, #tpu.memory_space<semaphore_mem>>
    %74 = tpu.memref_squeeze %73 : memref<1x!tpu.dma_semaphore, #tpu.memory_space<semaphore_mem>> -> memref<!tpu.dma_semaphore, #tpu.memory_space<semaphore_mem>>
    tpu.wait_dma2 semaphore(%74 : memref<!tpu.dma_semaphore, #tpu.memory_space<semaphore_mem>>) src(%71 : memref<1x128xf32, #tpu.memory_space<any>>) dst(%72 : memref<1x128xf32, #tpu.memory_space<vmem>>)
    %c0_61 = arith.constant 0 : index
    %c0_62 = arith.constant 0 : index
    %75 = vector.load %arg8[%c0_61, %c0_62] : memref<8x256xf32, #tpu.memory_space<vmem>>, vector<8x256xf32>
    %c0_63 = arith.constant 0 : index
    %c0_64 = arith.constant 0 : index
    %76 = vector.load %arg2[%c0_63, %c0_64] : memref<256x512xf32, #tpu.memory_space<vmem>>, vector<256x512xf32>
    %cst = arith.constant dense<0.000000e+00> : vector<8x512xf32>
    %77 = tpu.matmul %75, %76, %cst {dimension_numbers = #tpu.dot_dimension_numbers<[1], [0], [0], [1], [0, 0, 1, 1], [], []>} : vector<8x256xf32>, vector<256x512xf32>, vector<8x512xf32> -> vector<8x512xf32>
    %c0_65 = arith.constant 0 : index
    %c0_66 = arith.constant 0 : index
    %78 = vector.load %arg3[%c0_65, %c0_66] : memref<1x512xf32, #tpu.memory_space<vmem>>, vector<1x512xf32>
    %79 = vector.broadcast %78 : vector<1x512xf32> to vector<8x512xf32>
    %80 = arith.addf %77, %79 : vector<8x512xf32>
    %81 = vector.extract_strided_slice %80 {offsets = [0, 0], sizes = [8, 128], strides = [1, 1]} : vector<8x512xf32> to vector<8x128xf32>
    %82 = arith.negf %81 : vector<8x128xf32>
    %83 = math.exp %82 : vector<8x128xf32>
    %cst_67 = arith.constant 1.000000e+00 : f32
    %84 = vector.broadcast %cst_67 : f32 to vector<8x128xf32>
    %85 = arith.addf %84, %83 : vector<8x128xf32>
    %86 = arith.divf %84, %85 : vector<8x128xf32>
    %87 = vector.extract_strided_slice %80 {offsets = [0, 256], sizes = [8, 128], strides = [1, 1]} : vector<8x512xf32> to vector<8x128xf32>
    %88 = math.tanh %87 : vector<8x128xf32>
    %89 = arith.mulf %86, %88 : vector<8x128xf32>
    %90 = vector.extract_strided_slice %80 {offsets = [0, 128], sizes = [8, 128], strides = [1, 1]} : vector<8x512xf32> to vector<8x128xf32>
    %91 = arith.negf %90 : vector<8x128xf32>
    %92 = math.exp %91 : vector<8x128xf32>
    %cst_68 = arith.constant 1.000000e+00 : f32
    %93 = vector.broadcast %cst_68 : f32 to vector<8x128xf32>
    %94 = arith.addf %93, %92 : vector<8x128xf32>
    %95 = arith.divf %93, %94 : vector<8x128xf32>
    %96 = arith.mulf %95, %42 : vector<8x128xf32>
    %97 = arith.addf %89, %96 : vector<8x128xf32>
    %98 = vector.extract_strided_slice %80 {offsets = [0, 384], sizes = [8, 128], strides = [1, 1]} : vector<8x512xf32> to vector<8x128xf32>
    %99 = arith.negf %98 : vector<8x128xf32>
    %100 = math.exp %99 : vector<8x128xf32>
    %cst_69 = arith.constant 1.000000e+00 : f32
    %101 = vector.broadcast %cst_69 : f32 to vector<8x128xf32>
    %102 = arith.addf %101, %100 : vector<8x128xf32>
    %103 = arith.divf %101, %102 : vector<8x128xf32>
    %c0_70 = arith.constant 0 : index
    %c0_71 = arith.constant 0 : index
    %104 = vector.load %arg7[%c0_70, %c0_71] : memref<8x128xf32, #tpu.memory_space<vmem>>, vector<8x128xf32>
    tpu.vector_store %arg7[%c0_70, %c0_71], %97 {strides = array<i32>} : memref<8x128xf32, #tpu.memory_space<vmem>>, vector<8x128xf32>,
    %105 = math.tanh %97 : vector<8x128xf32>
    %106 = arith.mulf %103, %105 : vector<8x128xf32>
    %c0_72 = arith.constant 0 : index
    %c0_73 = arith.constant 0 : index
    %107 = vector.load %arg6[%c0_72, %c0_73] : memref<8x128xf32, #tpu.memory_space<vmem>>, vector<8x128xf32>
    tpu.vector_store %arg6[%c0_72, %c0_73], %106 {strides = array<i32>} : memref<8x128xf32, #tpu.memory_space<vmem>>, vector<8x128xf32>,
    return
  }
}

</mosaic_0001>

<bundles_post_ra>
// kernel: tpu_custom_call.1
= control target key start
LH: loop header
LB: loop body
LE: loop exit
PB: predicated region body
PF: predicated region fallthrough
CT: control target
= control target key end

     0   :  { %13 = vsyncpa [#allocation7], 0  ;;  %s1383_s0 = inlined_call_operand.hbm [shape: s32[8], index: 0, kind: input, shape index: {}]   ;;  %s1384_s1 = inlined_call_operand.hbm [shape: f32[16,128], index: 1, kind: input, shape index: {}]   ;;  %s1385_s2 = inlined_call_operand.hbm [shape: f32[256,512], index: 2, kind: input, shape index: {}]   ;;  %s1386_s3 = inlined_call_operand.hbm [shape: f32[1,512], index: 3, kind: input, shape index: {}]   ;;  %s1387_s4 = inlined_call_operand.vmem [shape: f32[8,128], index: 4, kind: input, shape index: {}]   ;;  %s1388_s5 = inlined_call_operand.vmem [shape: f32[8,128], index: 5, kind: input, shape index: {}]   ;;  %s1389_s6 = inlined_call_operand.hbm [shape: f32[8,128], index: 6, kind: output, shape index: {0}]   ;;  %s1390_s7 = inlined_call_operand.hbm [shape: f32[8,128], index: 7, kind: output, shape index: {1}]  }
   0x1   :  { %14 = vsyncpa [#allocation5], 0 }
   0x2   :  { %15 = vsyncpa [#allocation10], 0 }
   0x3   :  { %16 = vsyncpa [#allocation6], 0 }
   0x4   :  { %17 = vsyncpa [#allocation13], 0  ;;  %s815_s26 = scalar_lea.hbm %s1383_s0, 16 }
   0x5   :  { %p816_p0 = scmp.ne.s32.totalorder %s1383_s0, %s815_s26  ;;  %p819_p1 = scmp.lt.u32.totalorder %s815_s26, %s1383_s0 }
   0x7   :  { %p821_p2 = pnand %p819_p1, %p816_p0 }
   0x9   :  { %824 = shalt.err (!%p821_p2)
}
   0xa   :  { %s1131_s8 = smov [#allocation4]   ;;  %s1132_s11 = smov [#allocation8]  }
   0xb   :  { %25 = dma.hbm_to_smem %s1383_s0, 16, %s1131_s8, [#allocation7]  }
   0xc   :  { %s31_s12 = sshll.u32 %s1132_s11, 4  ;;  %s825_s15 = scalar_lea.hbm %s1385_s2, 16384  ;;  %s32_s12 = int_to_ptr.vmem [resolvable:$true] %s31_s12 }
   0xd   :  { %p826_p3 = scmp.ne.s32.totalorder %s1385_s2, %s825_s15  ;;  %p829_p4 = scmp.lt.u32.totalorder %s825_s15, %s1385_s2 }
   0xf   :  { %p831_p5 = pnand %p829_p4, %p826_p3 }
  0x11   :  { %834 = shalt.err (!%p831_p5)
}
  0x12   :  { %s835_s20 = scalar_lea.vmem %s32_s12, 16384  ;;  %p840_p7 = scmp.lt.s32.totalorder %s32_s12, %s32_s12 }
  0x13   :  { %p836_p6 = scmp.ne.s32.totalorder %s32_s12, %s835_s20  ;;  %p841_p8 = scmp.lt.s32.totalorder %s835_s20, %s835_s20 }
  0x15   :  { %p842_p9 = por %p841_p8, %p840_p7 }
  0x17   :  { %p843_p10 = pnand %p842_p9, %p836_p6 }
  0x19   :  { %846 = shalt.err (!%p843_p10)
}
  0x1a   :  { %s1133_s0 = smov 512   ;;  %s1134_s21 = smov 32  }
  0x1b   :  { %37 = dma.hbm_to_vmem [thread:$0]  %s1385_s2, 16384, %s32_s12, [#allocation5], %s1133_s0, %s1133_s0, %s1134_s21  }
  0x1c   :  { %s1135_s24 = smov [#allocation9]   ;;  %s847_s28 = scalar_lea.hbm %s1386_s3, 64 }
  0x1d   :  { %s44_s25 = sshll.u32 %s1135_s24, 4  ;;  %p848_p11 = scmp.ne.s32.totalorder %s1386_s3, %s847_s28  ;;  %s45_s25 = int_to_ptr.vmem [resolvable:$true] %s44_s25 }
  0x1e   :  { %p851_p12 = scmp.lt.u32.totalorder %s847_s28, %s1386_s3 }
  0x20   :  { %p853_p13 = pnand %p851_p12, %p848_p11 }
  0x22   :  { %856 = shalt.err (!%p853_p13)
}
  0x23   :  { %s857_s10 = scalar_lea.vmem %s45_s25, 64  ;;  %p862_p1 = scmp.lt.s32.totalorder %s45_s25, %s45_s25 }
  0x24   :  { %p858_p0 = scmp.ne.s32.totalorder %s45_s25, %s857_s10  ;;  %p863_p2 = scmp.lt.s32.totalorder %s857_s10, %s857_s10 }
  0x26   :  { %p864_p3 = por %p863_p2, %p862_p1 }
  0x28   :  { %p865_p4 = pnand %p864_p3, %p858_p0 }
  0x2a   :  { %868 = shalt.err (!%p865_p4)
}
  0x2b   :  { %47 = dma.hbm_to_vmem [thread:$0]  %s1386_s3, 64, %s45_s25, [#allocation10]  }
  0x2c   :  { %1105 = dma.done.wait [#allocation7], 16  }
  0x2d   :  { %1106 = vsyncadd [#allocation7], 4294967280 }
  0x2e   :  { %1107 = dma.done.wait [#allocation5], 16384  }
  0x2f   :  { %1108 = vsyncadd [#allocation5], 4294950912 }
  0x30   :  { %1109 = dma.done.wait [#allocation10], 64  }
  0x31   :  { %1110 = vsyncadd [#allocation10], 4294967232 }
  0x32   :  { %61 = sfence }
  0x33   :  { %s62_s12 = sld [smem:[#allocation4]]  ;;  %v1225_v0 = vld [vmem:[%s1388_s5] sm:$0xff]  ;;  %s1136_s15 = smov [#allocation2]  }
  0x34   :  { %s72_s16 = sshll.u32 %s1136_s15, 4  ;;  %s1227_s17 = sld [smem:[#allocation4 + $0x1]]  ;;  %s1229_s16 = int_to_ptr.vmem [resolvable:$true] %s72_s16 }
  0x35   :  { %s1137_s3 = smov [#allocation2 + $0x1]   ;;  %s1231_s19 = sld [smem:[#allocation4 + $0x2]] }
  0x36   :  { %s88_s18 = sshll.u32 %s1137_s3, 4  ;;  %s1138_s20 = smov [#allocation2 + $0x2]   ;;  %s1233_s18 = int_to_ptr.vmem [resolvable:$true] %s88_s18 }
  0x37   :  { %s104_s0 = sshll.u32 %s1138_s20, 4  ;;  %s1235_s21 = sld [smem:[#allocation4 + $0x3]]  ;;  %s1237_s0 = int_to_ptr.vmem [resolvable:$true] %s104_s0 }
  0x38   :  { %s1246_s29 = scalar_lea.hbm %s1384_s1, 256 }
  0x39   :  { %s630_s22 = sshll.u32 %s62_s12, 4 }
  0x3a   :  { %s64_s24 = scalar_lea.hbm %s1384_s1, %s630_s22  ;;  %s632_s25 = sshll.u32 %s1227_s17, 4 }
  0x3b   :  { %s869_s26 = scalar_lea.hbm %s64_s24, 16  ;;  %p872_p6 = scmp.lt.u32.totalorder %s64_s24, %s1384_s1 }
  0x3c   :  { %p870_p5 = scmp.ne.s32.totalorder %s64_s24, %s869_s26  ;;  %p873_p7 = scmp.lt.u32.totalorder %s1246_s29, %s869_s26 }
  0x3d   :  { %p875_p9 = scmp.lt.u32.totalorder %s869_s26, %s64_s24 }
  0x3e   :  { %p874_p8 = por %p873_p7, %p872_p6 }
  0x40   :  { %p876_p10 = por %p875_p9, %p874_p8 }
  0x42   :  { %p877_p11 = pnand %p876_p10, %p870_p5 }
  0x44   :  { %880 = shalt.err (!%p877_p11)  }
  0x45   :  { %s881_s9 = scalar_lea.vmem %s1229_s16, 16  ;;  %s1255_s10 = scalar_lea.vmem %s1229_s16, 256 }
  0x46   :  { %p882_p12 = scmp.ne.s32.totalorder %s1229_s16, %s881_s9  ;;  %p886_p13 = scmp.lt.s32.totalorder %s1229_s16, %s1229_s16 }
  0x47   :  { %p887_p0 = scmp.lt.s32.totalorder %s1255_s10, %s881_s9 }
  0x49   :  { %p888_p1 = por %p887_p0, %p886_p13 }
  0x4b   :  { %p889_p2 = pnand %p888_p1, %p882_p12 }
  0x4d   :  { %892 = shalt.err (!%p889_p2)  }
  0x4e   :  { %75 = dma.hbm_to_vmem [thread:$0]  %s64_s24, 16, %s1229_s16, [#allocation3] }
  0x4f   :  { %s78_s12 = scalar_lea.hbm %s1384_s1, %s632_s25  ;;  %s634_s13 = sshll.u32 %s1231_s19, 4 }
  0x50   :  { %s893_s14 = scalar_lea.hbm %s78_s12, 16  ;;  %p896_p4 = scmp.lt.u32.totalorder %s78_s12, %s1384_s1 }
  0x51   :  { %p894_p3 = scmp.ne.s32.totalorder %s78_s12, %s893_s14  ;;  %p897_p5 = scmp.lt.u32.totalorder %s1246_s29, %s893_s14 }
  0x52   :  { %p899_p7 = scmp.lt.u32.totalorder %s893_s14, %s78_s12 }
  0x53   :  { %p898_p6 = por %p897_p5, %p896_p4 }
  0x55   :  { %p900_p8 = por %p899_p7, %p898_p6 }
  0x57   :  { %p901_p9 = pnand %p900_p8, %p894_p3 }
  0x59   :  { %904 = shalt.err (!%p901_p9)  }
  0x5a   :  { %s905_s3 = scalar_lea.vmem %s1233_s18, 16  ;;  %p910_p11 = scmp.lt.s32.totalorder %s1233_s18, %s1229_s16 }
  0x5b   :  { %p906_p10 = scmp.ne.s32.totalorder %s1233_s18, %s905_s3  ;;  %p911_p12 = scmp.lt.s32.totalorder %s1255_s10, %s905_s3 }
  0x5d   :  { %p912_p13 = por %p911_p12, %p910_p11 }
  0x5f   :  { %p913_p0 = pnand %p912_p13, %p906_p10 }
  0x61   :  { %916 = shalt.err (!%p913_p0)  }
  0x62   :  { %91 = dma.hbm_to_vmem [thread:$0]  %s78_s12, 16, %s1233_s18, [#allocation3 + $0x1] }
  0x63   :  { %s94_s22 = scalar_lea.hbm %s1384_s1, %s634_s13  ;;  %s636_s5 = sshll.u32 %s1235_s21, 4 }
  0x64   :  { %s917_s23 = scalar_lea.hbm %s94_s22, 16  ;;  %p920_p2 = scmp.lt.u32.totalorder %s94_s22, %s1384_s1 }
  0x65   :  { %p918_p1 = scmp.ne.s32.totalorder %s94_s22, %s917_s23  ;;  %p921_p3 = scmp.lt.u32.totalorder %s1246_s29, %s917_s23 }
  0x66   :  { %p923_p5 = scmp.lt.u32.totalorder %s917_s23, %s94_s22 }
  0x67   :  { %p922_p4 = por %p921_p3, %p920_p2 }
  0x69   :  { %p924_p6 = por %p923_p5, %p922_p4 }
  0x6b   :  { %p925_p7 = pnand %p924_p6, %p918_p1 }
  0x6d   :  { %928 = shalt.err (!%p925_p7)  }
  0x6e   :  { %s929_s18 = scalar_lea.vmem %s1237_s0, 16  ;;  %p934_p9 = scmp.lt.s32.totalorder %s1237_s0, %s1229_s16 }
  0x6f   :  { %p930_p8 = scmp.ne.s32.totalorder %s1237_s0, %s929_s18  ;;  %p935_p10 = scmp.lt.s32.totalorder %s1255_s10, %s929_s18 }
  0x71   :  { %p936_p11 = por %p935_p10, %p934_p9 }
  0x73   :  { %p937_p12 = pnand %p936_p11, %p930_p8 }
  0x75   :  { %940 = shalt.err (!%p937_p12)  }
  0x76   :  { %107 = dma.hbm_to_vmem [thread:$0]  %s94_s22, 16, %s1237_s0, [#allocation3 + $0x2] }
  0x77   :  { %s110_s27 = scalar_lea.hbm %s1384_s1, %s636_s5  ;;  %s1139_s28 = smov [#allocation2 + $0x3]  }
  0x78   :  { %s120_s30 = sshll.u32 %s1139_s28, 4  ;;  %s1292_s8 = sld [smem:[#allocation4 + $0x4]]  ;;  %s121_s30 = int_to_ptr.vmem [resolvable:$true] %s120_s30 }
  0x79   :  { %s941_s9 = scalar_lea.hbm %s110_s27, 16  ;;  %p944_p0 = scmp.lt.u32.totalorder %s110_s27, %s1384_s1 }
  0x7a   :  { %p942_p13 = scmp.ne.s32.totalorder %s110_s27, %s941_s9  ;;  %p945_p1 = scmp.lt.u32.totalorder %s1246_s29, %s941_s9 }
  0x7b   :  { %p947_p3 = scmp.lt.u32.totalorder %s941_s9, %s110_s27 }
  0x7c   :  { %p946_p2 = por %p945_p1, %p944_p0 }
  0x7e   :  { %p948_p4 = por %p947_p3, %p946_p2 }
  0x80   :  { %p949_p5 = pnand %p948_p4, %p942_p13 }
  0x82   :  { %952 = shalt.err (!%p949_p5)  }
  0x83   :  { %s953_s0 = scalar_lea.vmem %s121_s30, 16  ;;  %p958_p7 = scmp.lt.s32.totalorder %s121_s30, %s1229_s16 }
  0x84   :  { %p954_p6 = scmp.ne.s32.totalorder %s121_s30, %s953_s0  ;;  %p959_p8 = scmp.lt.s32.totalorder %s1255_s10, %s953_s0 }
  0x86   :  { %p960_p9 = por %p959_p8, %p958_p7 }
  0x88   :  { %p961_p10 = pnand %p960_p9, %p954_p6 }
  0x8a   :  { %964 = shalt.err (!%p961_p10)  }
  0x8b   :  { %123 = dma.hbm_to_vmem [thread:$0]  %s110_s27, 16, %s121_s30, [#allocation3 + $0x3] }
  0x8c   :  { %s1140_s12 = smov [#allocation2 + $0x4]   ;;  %s1300_s14 = sld [smem:[#allocation4 + $0x5]] }
  0x8d   :  { %s136_s13 = sshll.u32 %s1140_s12, 4  ;;  %s1141_s15 = smov [#allocation2 + $0x5]   ;;  %s137_s13 = int_to_ptr.vmem [resolvable:$true] %s136_s13 }
  0x8e   :  { %s152_s17 = sshll.u32 %s1141_s15, 4  ;;  %s1302_s3 = sld [smem:[#allocation4 + $0x6]]  ;;  %s1305_s17 = int_to_ptr.vmem [resolvable:$true] %s152_s17 }
  0x8f   :  { %s638_s19 = sshll.u32 %s1292_s8, 4 }
  0x90   :  { %s126_s5 = scalar_lea.hbm %s1384_s1, %s638_s19 }
  0x91   :  { %s965_s23 = scalar_lea.hbm %s126_s5, 16  ;;  %p968_p12 = scmp.lt.u32.totalorder %s126_s5, %s1384_s1 }
  0x92   :  { %p966_p11 = scmp.ne.s32.totalorder %s126_s5, %s965_s23  ;;  %p969_p13 = scmp.lt.u32.totalorder %s1246_s29, %s965_s23 }
  0x93   :  { %p971_p1 = scmp.lt.u32.totalorder %s965_s23, %s126_s5 }
  0x94   :  { %p970_p0 = por %p969_p13, %p968_p12 }
  0x96   :  { %p972_p2 = por %p971_p1, %p970_p0 }
  0x98   :  { %p973_p3 = pnand %p972_p2, %p966_p11 }
  0x9a   :  { %976 = shalt.err (!%p973_p3)  }
  0x9b   :  { %s977_s18 = scalar_lea.vmem %s137_s13, 16  ;;  %p982_p5 = scmp.lt.s32.totalorder %s137_s13, %s1229_s16 }
  0x9c   :  { %p978_p4 = scmp.ne.s32.totalorder %s137_s13, %s977_s18  ;;  %p983_p6 = scmp.lt.s32.totalorder %s1255_s10, %s977_s18 }
  0x9e   :  { %p984_p7 = por %p983_p6, %p982_p5 }
  0xa0   :  { %p985_p8 = pnand %p984_p7, %p978_p4 }
  0xa2   :  { %988 = shalt.err (!%p985_p8)  }
  0xa3   :  { %139 = dma.hbm_to_vmem [thread:$0]  %s126_s5, 16, %s137_s13, [#allocation3 + $0x4] }
  0xa4   :  { %s640_s21 = sshll.u32 %s1300_s14, 4  ;;  %s1142_s26 = smov [#allocation2 + $0x6]  }
  0xa5   :  { %s168_s27 = sshll.u32 %s1142_s26, 4  ;;  %s142_s8 = scalar_lea.hbm %s1384_s1, %s640_s21  ;;  %s1320_s27 = int_to_ptr.vmem [resolvable:$true] %s168_s27 }
  0xa6   :  { %s989_s9 = scalar_lea.hbm %s142_s8, 16  ;;  %p992_p10 = scmp.lt.u32.totalorder %s142_s8, %s1384_s1 }
  0xa7   :  { %p990_p9 = scmp.ne.s32.totalorder %s142_s8, %s989_s9  ;;  %p993_p11 = scmp.lt.u32.totalorder %s1246_s29, %s989_s9 }
  0xa8   :  { %p995_p13 = scmp.lt.u32.totalorder %s989_s9, %s142_s8 }
  0xa9   :  { %p994_p12 = por %p993_p11, %p992_p10 }
  0xab   :  { %p996_p0 = por %p995_p13, %p994_p12 }
  0xad   :  { %p997_p1 = pnand %p996_p0, %p990_p9 }
  0xaf   :  { %1000 = shalt.err (!%p997_p1)  }
  0xb0   :  { %s1001_s0 = scalar_lea.vmem %s1305_s17, 16  ;;  %p1006_p3 = scmp.lt.s32.totalorder %s1305_s17, %s1229_s16 }
  0xb1   :  { %p1002_p2 = scmp.ne.s32.totalorder %s1305_s17, %s1001_s0  ;;  %p1007_p4 = scmp.lt.s32.totalorder %s1255_s10, %s1001_s0 }
  0xb3   :  { %p1008_p5 = por %p1007_p4, %p1006_p3 }
  0xb5   :  { %p1009_p6 = pnand %p1008_p5, %p1002_p2 }
  0xb7   :  { %1012 = shalt.err (!%p1009_p6)  }
  0xb8   :  { %155 = dma.hbm_to_vmem [thread:$0]  %s142_s8, 16, %s1305_s17, [#allocation3 + $0x5] }
  0xb9   :  { %s642_s12 = sshll.u32 %s1302_s3, 4  ;;  %s643_s13 = sld [smem:[#allocation4 + $0x7]] }
  0xba   :  { %s158_s19 = scalar_lea.hbm %s1384_s1, %s642_s12 }
  0xbb   :  { %s1013_s20 = scalar_lea.hbm %s158_s19, 16  ;;  %p1016_p8 = scmp.lt.u32.totalorder %s158_s19, %s1384_s1 }
  0xbc   :  { %p1014_p7 = scmp.ne.s32.totalorder %s158_s19, %s1013_s20  ;;  %p1017_p9 = scmp.lt.u32.totalorder %s1246_s29, %s1013_s20 }
  0xbd   :  { %p1019_p11 = scmp.lt.u32.totalorder %s1013_s20, %s158_s19 }
  0xbe   :  { %p1018_p10 = por %p1017_p9, %p1016_p8 }
  0xc0   :  { %p1020_p12 = por %p1019_p11, %p1018_p10 }
  0xc2   :  { %p1021_p13 = pnand %p1020_p12, %p1014_p7 }
  0xc4   :  { %1024 = shalt.err (!%p1021_p13)  }
  0xc5   :  { %s1025_s17 = scalar_lea.vmem %s1320_s27, 16  ;;  %p1030_p1 = scmp.lt.s32.totalorder %s1320_s27, %s1229_s16 }
  0xc6   :  { %p1026_p0 = scmp.ne.s32.totalorder %s1320_s27, %s1025_s17  ;;  %p1031_p2 = scmp.lt.s32.totalorder %s1255_s10, %s1025_s17 }
  0xc8   :  { %p1032_p3 = por %p1031_p2, %p1030_p1 }
  0xca   :  { %p1033_p4 = pnand %p1032_p3, %p1026_p0 }
  0xcc   :  { %1036 = shalt.err (!%p1033_p4)  }
  0xcd   :  { %171 = dma.hbm_to_vmem [thread:$0]  %s158_s19, 16, %s1320_s27, [#allocation3 + $0x6]  ;;  %v188_v1 = vld [vmem:[%s1387_s4] sm:$0xff] }
  0xce   :  { %s1143_s3 = smov [#allocation2 + $0x7]   ;;  %s644_s24 = sshll.u32 %s643_s13, 4 }
  0xcf   :  { %s184_s23 = sshll.u32 %s1143_s3, 4  ;;  %s174_s28 = scalar_lea.hbm %s1384_s1, %s644_s24  ;;  %s185_s23 = int_to_ptr.vmem [resolvable:$true] %s184_s23 }
  0xd0   :  { %s1037_s30 = scalar_lea.hbm %s174_s28, 16  ;;  %p1040_p6 = scmp.lt.u32.totalorder %s174_s28, %s1384_s1 }
  0xd1   :  { %p1038_p5 = scmp.ne.s32.totalorder %s174_s28, %s1037_s30  ;;  %p1041_p7 = scmp.lt.u32.totalorder %s1246_s29, %s1037_s30 }
  0xd2   :  { %p1043_p9 = scmp.lt.u32.totalorder %s1037_s30, %s174_s28 }
  0xd3   :  { %p1042_p8 = por %p1041_p7, %p1040_p6 }
  0xd5   :  { %p1044_p10 = por %p1043_p9, %p1042_p8 }
  0xd7   :  { %p1045_p11 = pnand %p1044_p10, %p1038_p5 }
  0xd9   :  { %1048 = shalt.err (!%p1045_p11)  }
  0xda   :  { %s1049_s27 = scalar_lea.vmem %s185_s23, 16  ;;  %p1054_p13 = scmp.lt.s32.totalorder %s185_s23, %s1229_s16 }
  0xdb   :  { %p1050_p12 = scmp.ne.s32.totalorder %s185_s23, %s1049_s27  ;;  %p1055_p0 = scmp.lt.s32.totalorder %s1255_s10, %s1049_s27 }
  0xdd   :  { %p1056_p1 = por %p1055_p0, %p1054_p13 }
  0xdf   :  { %p1057_p2 = pnand %p1056_p1, %p1050_p12 }
  0xe1   :  { %1060 = shalt.err (!%p1057_p2)  }
  0xe2   :  { %187 = dma.hbm_to_vmem [thread:$0]  %s174_s28, 16, %s185_s23, [#allocation3 + $0x7] }
  0xe3   :  { %189 = vst [vmem:[#allocation2 + $0x8] sm:$0xff] %v188_v1 }
  0xe4   :  { %1111 = dma.done.wait [#allocation3], 16 }
  0xe5   :  { %1112 = vsyncadd [#allocation3], 4294967280 }
  0xe6   :  { %1113 = dma.done.wait [#allocation3 + $0x1], 16 }
  0xe7   :  { %1114 = vsyncadd [#allocation3 + $0x1], 4294967280 }
  0xe8   :  { %1115 = dma.done.wait [#allocation3 + $0x2], 16 }
  0xe9   :  { %1116 = vsyncadd [#allocation3 + $0x2], 4294967280 }
  0xea   :  { %1117 = dma.done.wait [#allocation3 + $0x3], 16 }
  0xeb   :  { %1118 = vsyncadd [#allocation3 + $0x3], 4294967280 }
  0xec   :  { %1119 = dma.done.wait [#allocation3 + $0x4], 16 }
  0xed   :  { %1120 = vsyncadd [#allocation3 + $0x4], 4294967280 }
  0xee   :  { %1121 = dma.done.wait [#allocation3 + $0x5], 16 }
  0xef   :  { %1122 = vsyncadd [#allocation3 + $0x5], 4294967280 }
  0xf0   :  { %1123 = dma.done.wait [#allocation3 + $0x6], 16 }
  0xf1   :  { %1124 = vsyncadd [#allocation3 + $0x6], 4294967280 }
  0xf2   :  { %1125 = dma.done.wait [#allocation3 + $0x7], 16 }
  0xf3   :  { %1126 = vsyncadd [#allocation3 + $0x7], 4294967280  ;;  %v211_v2 = vld [vmem:[#allocation8 + $0x8] sm:$0xff]  ;;  %v210_v4 = vld [vmem:[#allocation8] sm:$0xff]  ;;  %s1144_s1 = smov [#allocation12]  }
  0xf4   :  { %v215_v3 = vld [vmem:[#allocation8 + $0x28] sm:$0xff]  ;;  %v214_v6 = vld [vmem:[#allocation8 + $0x20] sm:$0xff]  ;;  %v213_v20 = vld [vmem:[#allocation8 + $0x18] sm:$0xff]  ;;  %s544_s4 = sshll.u32 %s1144_s1, 4  ;;  %s545_s4 = int_to_ptr.vmem [resolvable:$true] %s544_s4 }
  0xf5   :  { %v656_v5 = vpack.c.bf16 %v215_v3, %v211_v2  ;;  %v219_v7 = vld [vmem:[#allocation8 + $0x48] sm:$0xff]  ;;  %v658_v9 = vpack.c.bf16 %v214_v6, %v210_v4  ;;  %v218_v11 = vld [vmem:[#allocation8 + $0x40] sm:$0xff]  ;;  %v217_v21 = vld [vmem:[#allocation8 + $0x38] sm:$0xff]  ;;  %s1061_s16 = scalar_lea.vmem %s545_s4, 128  ;;  %p1066_p4 = scmp.lt.s32.totalorder %s545_s4, %s545_s4 }
  0xf6   :  { %v223_v8 = vld [vmem:[#allocation8 + $0x68] sm:$0xff]  ;;  %v222_v12 = vld [vmem:[#allocation8 + $0x60] sm:$0xff]  ;;  %v720_v23 = vpack.c.bf16 %v217_v21, %v213_v20  ;;  %v212_v24 = vld [vmem:[#allocation8 + $0x10] sm:$0xff]  ;;  %p1062_p3 = scmp.ne.s32.totalorder %s545_s4, %s1061_s16  ;;  %p1067_p5 = scmp.lt.s32.totalorder %s1061_s16, %s1061_s16 }
  0xf7   :  { %v660_v10 = vpack.c.bf16 %v223_v8, %v219_v7  ;;  %v227_v13 = vld [vmem:[#allocation8 + $0x88] sm:$0xff]  ;;  %657 = vmatprep.subr.bf16.mxu0 %v656_v5  ;;  %v662_v15 = vpack.c.bf16 %v222_v12, %v218_v11  ;;  %v226_v16 = vld [vmem:[#allocation8 + $0x80] sm:$0xff]  ;;  %v216_v25 = vld [vmem:[#allocation8 + $0x30] sm:$0xff] }
  0xf8   :  { %v231_v14 = vld [vmem:[#allocation8 + $0xa8] sm:$0xff]  ;;  %659 = vmatpush1.bf16.msra.mxu0 %v658_v9  ;;  %v230_v17 = vld [vmem:[#allocation8 + $0xa0] sm:$0xff]  ;;  %v722_v26 = vpack.c.bf16 %v216_v25, %v212_v24  ;;  %721 = vmatprep.subr.bf16.mxu1 %v720_v23  ;;  %v221_v28 = vld [vmem:[#allocation8 + $0x58] sm:$0xff]  ;;  %p1068_p6 = por %p1067_p5, %p1066_p4 }
  0xf9   :  { %661 = vmatprep.subr.bf16.mxu0 %v660_v10  ;;  %v664_v18 = vpack.c.bf16 %v231_v14, %v227_v13  ;;  %v235_v19 = vld [vmem:[#allocation8 + $0xc8] sm:$0xff]  ;;  %v666_v27 = vpack.c.bf16 %v230_v17, %v226_v16  ;;  %v225_v29 = vld [vmem:[#allocation8 + $0x78] sm:$0xff]  ;;  %v220_v30 = vld [vmem:[#allocation8 + $0x50] sm:$0xff] }
  0xfa   :  { %v239_v22 = vld [vmem:[#allocation8 + $0xe8] sm:$0xff]  ;;  %v234_v32 = vld [vmem:[#allocation8 + $0xc0] sm:$0xff]  ;;  %723 = vmatpush1.bf16.msra.mxu1 %v722_v26  ;;  %v724_v34 = vpack.c.bf16 %v225_v29, %v221_v28  ;;  %v224_v35 = vld [vmem:[#allocation8 + $0x70] sm:$0xff]  ;;  %p1069_p7 = pnand %p1068_p6, %p1062_p3 }
  0xfb   :  { %v668_v31 = vpack.c.bf16 %v239_v22, %v235_v19  ;;  %v238_v33 = vld [vmem:[#allocation8 + $0xe0] sm:$0xff]  ;;  %v243_v36 = vld [vmem:[#allocation8 + $0x108] sm:$0xff]  ;;  %v726_v38 = vpack.c.bf16 %v224_v35, %v220_v30  ;;  %v229_v39 = vld [vmem:[#allocation8 + $0x98] sm:$0xff] }
  0xfc   :  { %663 = vmatpush1.bf16.msra.mxu0 %v662_v15  ;;  %v247_v37 = vld [vmem:[#allocation8 + $0x128] sm:$0xff]  ;;  %725 = vmatprep.subr.bf16.mxu1 %v724_v34  ;;  %v233_v40 = vld [vmem:[#allocation8 + $0xb8] sm:$0xff]  ;;  %v228_v41 = vld [vmem:[#allocation8 + $0x90] sm:$0xff]  ;;  %v670_v43 = vpack.c.bf16 %v238_v33, %v234_v32 }
  0xfd   :  { %665 = vmatprep.subr.bf16.mxu0 %v664_v18  ;;  %v232_v42 = vld [vmem:[#allocation8 + $0xb0] sm:$0xff]  ;;  %v242_v44 = vld [vmem:[#allocation8 + $0x100] sm:$0xff]  ;;  %v728_v46 = vpack.c.bf16 %v233_v40, %v229_v39  ;;  %v672_v47 = vpack.c.bf16 %v247_v37, %v243_v36  ;;  %v251_v48 = vld [vmem:[#allocation8 + $0x148] sm:$0xff] }
  0xfe   :  { %v246_v45 = vld [vmem:[#allocation8 + $0x120] sm:$0xff]  ;;  %727 = vmatpush1.bf16.msra.mxu1 %v726_v38  ;;  %v730_v49 = vpack.c.bf16 %v232_v42, %v228_v41  ;;  %v237_v50 = vld [vmem:[#allocation8 + $0xd8] sm:$0xff]  ;;  %v255_v52 = vld [vmem:[#allocation8 + $0x168] sm:$0xff] }
  0xff   :  { %v241_v51 = vld [vmem:[#allocation8 + $0xf8] sm:$0xff]  ;;  %729 = vmatprep.subr.bf16.mxu1 %v728_v46  ;;  %v236_v54 = vld [vmem:[#allocation8 + $0xd0] sm:$0xff]  ;;  %v674_v56 = vpack.c.bf16 %v246_v45, %v242_v44  ;;  %v676_v59 = vpack.c.bf16 %v255_v52, %v251_v48  ;;  %v250_v60 = vld [vmem:[#allocation8 + $0x140] sm:$0xff] }
 0x100   :  { %667 = vmatpush1.bf16.msra.mxu0 %v666_v27  ;;  %v732_v53 = vpack.c.bf16 %v241_v51, %v237_v50  ;;  %v240_v55 = vld [vmem:[#allocation8 + $0xf0] sm:$0xff]  ;;  %v245_v57 = vld [vmem:[#allocation8 + $0x118] sm:$0xff]  ;;  %v254_v61 = vld [vmem:[#allocation8 + $0x160] sm:$0xff] }
 0x101   :  { %669 = vmatprep.subr.bf16.mxu0 %v668_v31  ;;  %v249_v58 = vld [vmem:[#allocation8 + $0x138] sm:$0xff]  ;;  %v259_v62 = vld [vmem:[#allocation8 + $0x188] sm:$0xff]  ;;  %v734_v63 = vpack.c.bf16 %v240_v55, %v236_v54  ;;  %v244_v3 = vld [vmem:[#allocation8 + $0x110] sm:$0xff]  ;;  %v678_v7 = vpack.c.bf16 %v254_v61, %v250_v60 }
 0x102   :  { %731 = vmatpush1.bf16.msra.mxu1 %v730_v49  ;;  %v263_v1 = vld [vmem:[#allocation8 + $0x1a8] sm:$0xff]  ;;  %v736_v2 = vpack.c.bf16 %v249_v58, %v245_v57  ;;  %v248_v4 = vld [vmem:[#allocation8 + $0x130] sm:$0xff]  ;;  %v253_v5 = vld [vmem:[#allocation8 + $0x158] sm:$0xff] }
 0x103   :  { %733 = vmatprep.subr.bf16.mxu1 %v732_v53  ;;  %v257_v6 = vld [vmem:[#allocation8 + $0x178] sm:$0xff]  ;;  %v680_v8 = vpack.c.bf16 %v263_v1, %v259_v62  ;;  %v258_v9 = vld [vmem:[#allocation8 + $0x180] sm:$0xff]  ;;  %v267_v11 = vld [vmem:[#allocation8 + $0x1c8] sm:$0xff]  ;;  %v738_v12 = vpack.c.bf16 %v248_v4, %v244_v3 }
 0x104   :  { %671 = vmatpush1.bf16.msra.mxu0 %v670_v43  ;;  %v262_v10 = vld [vmem:[#allocation8 + $0x1a0] sm:$0xff]  ;;  %v271_v13 = vld [vmem:[#allocation8 + $0x1e8] sm:$0xff]  ;;  %v740_v14 = vpack.c.bf16 %v257_v6, %v253_v5  ;;  %v252_v15 = vld [vmem:[#allocation8 + $0x150] sm:$0xff] }
 0x105   :  { %673 = vmatprep.subr.bf16.mxu0 %v672_v47  ;;  %v256_v16 = vld [vmem:[#allocation8 + $0x170] sm:$0xff]  ;;  %v261_v17 = vld [vmem:[#allocation8 + $0x198] sm:$0xff]  ;;  %v682_v19 = vpack.c.bf16 %v262_v10, %v258_v9  ;;  %v684_v20 = vpack.c.bf16 %v271_v13, %v267_v11  ;;  %v266_v21 = vld [vmem:[#allocation8 + $0x1c0] sm:$0xff] }
 0x106   :  { %735 = vmatpush1.bf16.msra.mxu1 %v734_v63  ;;  %v265_v18 = vld [vmem:[#allocation8 + $0x1b8] sm:$0xff]  ;;  %v270_v22 = vld [vmem:[#allocation8 + $0x1e0] sm:$0xff]  ;;  %v275_v23 = vld [vmem:[#allocation8 + $0x208] sm:$0xff]  ;;  %v742_v24 = vpack.c.bf16 %v256_v16, %v252_v15 }
 0x107   :  { %737 = vmatprep.subr.bf16.mxu1 %v736_v2  ;;  %v279_v25 = vld [vmem:[#allocation8 + $0x228] sm:$0xff]  ;;  %v744_v26 = vpack.c.bf16 %v265_v18, %v261_v17  ;;  %v260_v27 = vld [vmem:[#allocation8 + $0x190] sm:$0xff]  ;;  %v269_v29 = vld [vmem:[#allocation8 + $0x1d8] sm:$0xff]  ;;  %v686_v31 = vpack.c.bf16 %v270_v22, %v266_v21 }
 0x108   :  { %675 = vmatpush1.bf16.msra.mxu0 %v674_v56  ;;  %v264_v28 = vld [vmem:[#allocation8 + $0x1b0] sm:$0xff]  ;;  %v273_v30 = vld [vmem:[#allocation8 + $0x1f8] sm:$0xff]  ;;  %v688_v32 = vpack.c.bf16 %v279_v25, %v275_v23  ;;  %v274_v33 = vld [vmem:[#allocation8 + $0x200] sm:$0xff] }
 0x109   :  { %677 = vmatprep.subr.bf16.mxu0 %v676_v59  ;;  %v278_v34 = vld [vmem:[#allocation8 + $0x220] sm:$0xff]  ;;  %v283_v35 = vld [vmem:[#allocation8 + $0x248] sm:$0xff]  ;;  %v746_v36 = vpack.c.bf16 %v264_v28, %v260_v27  ;;  %v748_v38 = vpack.c.bf16 %v273_v30, %v269_v29  ;;  %v268_v39 = vld [vmem:[#allocation8 + $0x1d0] sm:$0xff] }
 0x10a   :  { %739 = vmatpush1.bf16.msra.mxu1 %v738_v12  ;;  %v287_v37 = vld [vmem:[#allocation8 + $0x268] sm:$0xff]  ;;  %v272_v40 = vld [vmem:[#allocation8 + $0x1f0] sm:$0xff]  ;;  %v277_v41 = vld [vmem:[#allocation8 + $0x218] sm:$0xff]  ;;  %v690_v43 = vpack.c.bf16 %v278_v34, %v274_v33 }
 0x10b   :  { %741 = vmatprep.subr.bf16.mxu1 %v740_v14  ;;  %v281_v42 = vld [vmem:[#allocation8 + $0x238] sm:$0xff]  ;;  %v692_v44 = vpack.c.bf16 %v287_v37, %v283_v35  ;;  %v282_v45 = vld [vmem:[#allocation8 + $0x240] sm:$0xff]  ;;  %v291_v47 = vld [vmem:[#allocation8 + $0x288] sm:$0xff]  ;;  %v750_v48 = vpack.c.bf16 %v272_v40, %v268_v39 }
 0x10c   :  { %679 = vmatpush1.bf16.msra.mxu0 %v678_v7  ;;  %v286_v46 = vld [vmem:[#allocation8 + $0x260] sm:$0xff]  ;;  %v295_v49 = vld [vmem:[#allocation8 + $0x2a8] sm:$0xff]  ;;  %v752_v50 = vpack.c.bf16 %v281_v42, %v277_v41  ;;  %v276_v51 = vld [vmem:[#allocation8 + $0x210] sm:$0xff] }
 0x10d   :  { %681 = vmatprep.subr.bf16.mxu0 %v680_v8  ;;  %v280_v52 = vld [vmem:[#allocation8 + $0x230] sm:$0xff]  ;;  %v285_v53 = vld [vmem:[#allocation8 + $0x258] sm:$0xff]  ;;  %v694_v55 = vpack.c.bf16 %v286_v46, %v282_v45  ;;  %v290_v56 = vld [vmem:[#allocation8 + $0x280] sm:$0xff]  ;;  %v696_v57 = vpack.c.bf16 %v295_v49, %v291_v47 }
 0x10e   :  { %743 = vmatpush1.bf16.msra.mxu1 %v742_v24  ;;  %v289_v54 = vld [vmem:[#allocation8 + $0x278] sm:$0xff]  ;;  %v294_v58 = vld [vmem:[#allocation8 + $0x2a0] sm:$0xff]  ;;  %v299_v59 = vld [vmem:[#allocation8 + $0x2c8] sm:$0xff]  ;;  %v754_v61 = vpack.c.bf16 %v280_v52, %v276_v51 }
 0x10f   :  { %745 = vmatprep.subr.bf16.mxu1 %v744_v26  ;;  %v303_v60 = vld [vmem:[#allocation8 + $0x2e8] sm:$0xff]  ;;  %v756_v62 = vpack.c.bf16 %v289_v54, %v285_v53  ;;  %v284_v63 = vld [vmem:[#allocation8 + $0x250] sm:$0xff]  ;;  %v209_v2 = vld [vmem:[#allocation2 + $0x8] sm:$0xff]  ;;  %v698_v5 = vpack.c.bf16 %v294_v58, %v290_v56 }
 0x110   :  { %683 = vmatpush1.bf16.msra.mxu0 %v682_v19  ;;  %v288_v1 = vld [vmem:[#allocation8 + $0x270] sm:$0xff]  ;;  %v293_v3 = vld [vmem:[#allocation8 + $0x298] sm:$0xff]  ;;  %424 = vmatprep.mubr.f32.mxu0 %v209_v2  ;;  %v700_v6 = vpack.c.bf16 %v303_v60, %v299_v59  ;;  %v298_v7 = vld [vmem:[#allocation8 + $0x2c0] sm:$0xff] }
 0x111   :  { %685 = vmatprep.subr.bf16.mxu0 %v684_v20  ;;  %v297_v4 = vld [vmem:[#allocation8 + $0x2b8] sm:$0xff]  ;;  %495 = vmatprep.mubr.f32.mxu1 %v209_v2  ;;  %v302_v8 = vld [vmem:[#allocation8 + $0x2e0] sm:$0xff]  ;;  %v307_v9 = vld [vmem:[#allocation8 + $0x308] sm:$0xff]  ;;  %v758_v10 = vpack.c.bf16 %v288_v1, %v284_v63 }
 0x112   :  { %747 = vmatpush1.bf16.msra.mxu1 %v746_v36  ;;  %v311_v11 = vld [vmem:[#allocation8 + $0x328] sm:$0xff]  ;;  %v760_v12 = vpack.c.bf16 %v297_v4, %v293_v3  ;;  %v292_v13 = vld [vmem:[#allocation8 + $0x290] sm:$0xff]  ;;  %v301_v15 = vld [vmem:[#allocation8 + $0x2d8] sm:$0xff]  ;;  %v702_v17 = vpack.c.bf16 %v302_v8, %v298_v7  ;;  %v340_v7 = vlaneseq }
 0x113   :  { %749 = vmatprep.subr.bf16.mxu1 %v748_v38  ;;  %v296_v14 = vld [vmem:[#allocation8 + $0x2b0] sm:$0xff]  ;;  %v305_v16 = vld [vmem:[#allocation8 + $0x2f8] sm:$0xff]  ;;  %v704_v18 = vpack.c.bf16 %v311_v11, %v307_v9  ;;  %v306_v19 = vld [vmem:[#allocation8 + $0x300] sm:$0xff] }
 0x114   :  { %687 = vmatpush1.bf16.msra.mxu0 %v686_v31  ;;  %v310_v20 = vld [vmem:[#allocation8 + $0x320] sm:$0xff]  ;;  %v315_v21 = vld [vmem:[#allocation8 + $0x348] sm:$0xff]  ;;  %v762_v22 = vpack.c.bf16 %v296_v14, %v292_v13  ;;  %v764_v24 = vpack.c.bf16 %v305_v16, %v301_v15  ;;  %v300_v25 = vld [vmem:[#allocation8 + $0x2d0] sm:$0xff]  ;;  %v341_v8 = vshrl.u32 %v340_v7, 7 }
 0x115   :  { %689 = vmatprep.subr.bf16.mxu0 %v688_v32  ;;  %v319_v23 = vld [vmem:[#allocation8 + $0x368] sm:$0xff]  ;;  %v304_v26 = vld [vmem:[#allocation8 + $0x2f0] sm:$0xff]  ;;  %v309_v27 = vld [vmem:[#allocation8 + $0x318] sm:$0xff]  ;;  %v706_v29 = vpack.c.bf16 %v310_v20, %v306_v19 }
 0x116   :  { %751 = vmatpush1.bf16.msra.mxu1 %v750_v48  ;;  %v313_v28 = vld [vmem:[#allocation8 + $0x338] sm:$0xff]  ;;  %v708_v30 = vpack.c.bf16 %v319_v23, %v315_v21  ;;  %v314_v31 = vld [vmem:[#allocation8 + $0x340] sm:$0xff]  ;;  %v323_v33 = vld [vmem:[#allocation8 + $0x388] sm:$0xff]  ;;  %v766_v34 = vpack.c.bf16 %v304_v26, %v300_v25  ;;  %v342_v9 = vsub.s32 0, %v341_v8  ;;  %v346_v11 = vsub.s32 1, %v341_v8 }
 0x117   :  { %753 = vmatprep.subr.bf16.mxu1 %v752_v50  ;;  %v318_v32 = vld [vmem:[#allocation8 + $0x360] sm:$0xff]  ;;  %v327_v35 = vld [vmem:[#allocation8 + $0x3a8] sm:$0xff]  ;;  %v768_v36 = vpack.c.bf16 %v313_v28, %v309_v27  ;;  %v308_v37 = vld [vmem:[#allocation8 + $0x310] sm:$0xff]  ;;  %v354_v14 = vsub.s32 3, %v341_v8 }
 0x118   :  { %691 = vmatpush1.bf16.msra.mxu0 %v690_v43  ;;  %v312_v38 = vld [vmem:[#allocation8 + $0x330] sm:$0xff]  ;;  %v317_v39 = vld [vmem:[#allocation8 + $0x358] sm:$0xff]  ;;  %v710_v41 = vpack.c.bf16 %v318_v32, %v314_v31  ;;  %v712_v42 = vpack.c.bf16 %v327_v35, %v323_v33  ;;  %v322_v43 = vld [vmem:[#allocation8 + $0x380] sm:$0xff] }
 0x119   :  { %693 = vmatprep.subr.bf16.mxu0 %v692_v44  ;;  %v321_v40 = vld [vmem:[#allocation8 + $0x378] sm:$0xff]  ;;  %v326_v44 = vld [vmem:[#allocation8 + $0x3a0] sm:$0xff]  ;;  %v331_v45 = vld [vmem:[#allocation8 + $0x3c8] sm:$0xff]  ;;  %v770_v46 = vpack.c.bf16 %v312_v38, %v308_v37 }
 0x11a   :  { %755 = vmatpush1.bf16.msra.mxu1 %v754_v61  ;;  %v335_v47 = vld [vmem:[#allocation8 + $0x3e8] sm:$0xff]  ;;  %v772_v48 = vpack.c.bf16 %v321_v40, %v317_v39  ;;  %v316_v49 = vld [vmem:[#allocation8 + $0x350] sm:$0xff]  ;;  %v325_v51 = vld [vmem:[#allocation8 + $0x398] sm:$0xff]  ;;  %v714_v53 = vpack.c.bf16 %v326_v44, %v322_v43 }
 0x11b   :  { %757 = vmatprep.subr.bf16.mxu1 %v756_v62  ;;  %v320_v50 = vld [vmem:[#allocation8 + $0x370] sm:$0xff]  ;;  %v329_v52 = vld [vmem:[#allocation8 + $0x3b8] sm:$0xff]  ;;  %v716_v54 = vpack.c.bf16 %v335_v47, %v331_v45  ;;  %v334_v56 = vld [vmem:[#allocation8 + $0x3e0] sm:$0xff] }
 0x11c   :  { %695 = vmatpush1.bf16.msra.mxu0 %v694_v55  ;;  %v330_v55 = vld [vmem:[#allocation8 + $0x3c0] sm:$0xff]  ;;  %v776_v58 = vpack.c.bf16 %v329_v52, %v325_v51  ;;  %v324_v59 = vld [vmem:[#allocation8 + $0x390] sm:$0xff]  ;;  %v333_v61 = vld [vmem:[#allocation8 + $0x3d8] sm:$0xff] }
 0x11d   :  { %697 = vmatprep.subr.bf16.mxu0 %v696_v57  ;;  %v774_v57 = vpack.c.bf16 %v320_v50, %v316_v49  ;;  %v328_v60 = vld [vmem:[#allocation8 + $0x3b0] sm:$0xff]  ;;  %v337_v62 = vld [vmem:[#allocation8 + $0x3f8] sm:$0xff]  ;;  %v718_v63 = vpack.c.bf16 %v334_v56, %v330_v55 }
 0x11e   :  { %759 = vmatpush1.bf16.msra.mxu1 %v758_v10  ;;  %v778_v1 = vpack.c.bf16 %v328_v60, %v324_v59  ;;  %v780_v2 = vpack.c.bf16 %v337_v62, %v333_v61  ;;  %v332_v3 = vld [vmem:[#allocation8 + $0x3d0] sm:$0xff]  ;;  %v338_v10 = vld [vmem:[#allocation9] sm:$0xf] }
 0x11f   :  { %761 = vmatprep.subr.bf16.mxu1 %v760_v12  ;;  %v336_v4 = vld [vmem:[#allocation8 + $0x3f0] sm:$0xff]  ;;  %v343_v12 = vrot.slane %v338_v10, %v342_v9  ;;  %v347_v13 = vrot.slane %v338_v10, %v346_v11  ;;  %v355_v20 = vrot.slane %v338_v10, %v354_v14 }
 0x120   :  { %699 = vmatpush1.bf16.msra.mxu0 %v698_v5  ;;  %v208_v5 = vld [vmem:[#allocation2] sm:$0xff] }
 0x121   :  { %701 = vmatprep.subr.bf16.mxu0 %v700_v6  ;;  %v782_v6 = vpack.c.bf16 %v336_v4, %v332_v3 }
 0x122   :  { %763 = vmatpush1.bf16.msra.mxu1 %v762_v22  ;;  %v350_v22 = vsub.s32 2, %v341_v8 }
 0x123   :  { %765 = vmatprep.subr.bf16.mxu1 %v764_v24 }
 0x124   :  { %703 = vmatpush1.bf16.msra.mxu0 %v702_v17  ;;  %v351_v26 = vrot.slane %v338_v10, %v350_v22 }
 0x125   :  { %705 = vmatprep.subr.bf16.mxu0 %v704_v18 }
 0x126   :  { %767 = vmatpush1.bf16.msra.mxu1 %v766_v34 }
 0x127   :  { %769 = vmatprep.subr.bf16.mxu1 %v768_v36 }
 0x128   :  { %707 = vmatpush1.bf16.msra.mxu0 %v706_v29 }
 0x129   :  { %709 = vmatprep.subr.bf16.mxu0 %v708_v30 }
 0x12a   :  { %771 = vmatpush1.bf16.msra.mxu1 %v770_v46 }
 0x12b   :  { %773 = vmatprep.subr.bf16.mxu1 %v772_v48 }
 0x12c   :  { %711 = vmatpush1.bf16.msra.mxu0 %v710_v41 }
 0x12d   :  { %713 = vmatprep.subr.bf16.mxu0 %v712_v42 }
 0x12e   :  { %775 = vmatpush1.bf16.msra.mxu1 %v774_v57 }
 0x12f   :  { %777 = vmatprep.subr.bf16.mxu1 %v776_v58 }
 0x130   :  { %715 = vmatpush1.bf16.msra.mxu0 %v714_v53 }
 0x131   :  { %717 = vmatprep.subr.bf16.mxu0 %v716_v54 }
 0x132   :  { %779 = vmatpush1.bf16.msra.mxu1 %v778_v1 }
 0x133   :  { %781 = vmatprep.subr.bf16.mxu1 %v780_v2 }
 0x134   :  { %719 = vmatpush1.bf16.msra.mxu0 %v718_v63 }
 0x136   :  { %783 = vmatpush1.bf16.msra.mxu1 %v782_v6 }
 0x137   :  { %425 = vmatmul.mubr.f32.vlgmr.msra.gmra.mrb[0].mxu0 %v208_v5 }
 0x139   :  { %496 = vmatmul.mubr.f32.vlgmr.msra.gmra.mrb[0].mxu1 %v208_v5 }
 0x20a   :  { %v426_v15 = vpop.f32.mrb[0].mxu0 }
 0x20b   :  { %v427_v16 = vadd.f32 %v426_v15, %v343_v12  ;;  %v428_v17 = vpop.f32.mrb[1].mxu0 }
 0x20c   :  { %v429_v18 = vadd.f32 %v428_v17, %v347_v13  ;;  %v497_v23 = vpop.f32.mrb[0].mxu1 }
 0x20d   :  { %v645_v19 = vmul.f32 -1.442695, %v427_v16  ;;  %v499_v24 = vpop.f32.mrb[1].mxu1  ;;  %v498_v28 = vadd.f32 %v497_v23, %v351_v26 }
 0x20e   :  { %v646_v21 = vmul.f32 -1.442695, %v429_v18  ;;  %v500_v25 = vadd.f32 %v499_v24, %v355_v20 }
 0x20f   :  { %799 = vpow2.f32 %v645_v19 }
 0x210   :  { %801 = vpow2.f32 %v646_v21  ;;  %v647_v27 = vmul.f32 -1.442695, %v500_v25 }
 0x212   :  { %803 = vpow2.f32 %v647_v27 }
 0x213   :  { %805 = vtanh.f32 %v498_v28 }
 0x219   :  { %v800_v29 = vpop.eup %799 }
 0x21a   :  { %v802_v30 = vpop.eup %801  ;;  %v505_v31 = vadd.f32 1.0, %v800_v29 }
 0x21b   :  { %v513_v32 = vadd.f32 1.0, %v802_v30 }
 0x21c   :  { %807 = vrcp.f32 %v505_v31  ;;  %v804_v33 = vpop.eup %803 }
 0x21d   :  { %809 = vrcp.f32 %v513_v32  ;;  %v806_v34 = vpop.eup %805  ;;  %v521_v36 = vadd.f32 1.0, %v804_v33 }
 0x21f   :  { %811 = vrcp.f32 %v521_v36 }
 0x226   :  { %v808_v35 = vpop.eup %807 }
 0x227   :  { %v810_v37 = vpop.eup %809  ;;  %v509_v38 = vmul.f32 %v808_v35, %v806_v34 }
 0x228   :  { %v516_v39 = vmul.f32 %v810_v37, %v1225_v0 }
 0x22a   :  { %v517_v40 = vadd.f32 %v516_v39, %v509_v38 }
 0x22c   :  { %524 = vst [vmem:[#allocation12] sm:$0xff] %v517_v40  ;;  %813 = vtanh.f32 %v517_v40 }
 0x22d   :  { %1072 = shalt.err (!%p1069_p7)
}
 0x22e   :  { %s1073_s2 = scalar_lea.hbm %s1390_s7, 128 }
 0x22f   :  { %p1074_p8 = scmp.ne.s32.totalorder %s1390_s7, %s1073_s2  ;;  %p1077_p9 = scmp.lt.u32.totalorder %s1073_s2, %s1390_s7 }
 0x231   :  { %p1079_p10 = pnand %p1077_p9, %p1074_p8 }
 0x233   :  { %1082 = shalt.err (!%p1079_p10)
}
 0x234   :  { %547 = dma.vmem_to_hbm [thread:$0]  %s545_s4, 128, %s1390_s7, [#allocation13]   ;;  %v812_v0 = vpop.eup %811 }
 0x235   :  { %s1145_s19 = smov [#allocation11]  }
 0x236   :  { %s534_s20 = sshll.u32 %s1145_s19, 4  ;;  %v814_v41 = vpop.eup %813  ;;  %s535_s20 = int_to_ptr.vmem [resolvable:$true] %s534_s20 }
 0x237   :  { %v526_v42 = vmul.f32 %v814_v41, %v812_v0  ;;  %s1083_s22 = scalar_lea.vmem %s535_s20, 128  ;;  %p1088_p12 = scmp.lt.s32.totalorder %s535_s20, %s535_s20 }
 0x238   :  { %p1084_p11 = scmp.ne.s32.totalorder %s535_s20, %s1083_s22  ;;  %p1089_p13 = scmp.lt.s32.totalorder %s1083_s22, %s1083_s22 }
 0x239   :  { %527 = vst [vmem:[#allocation11] sm:$0xff] %v526_v42 }
 0x23a   :  { %p1090_p0 = por %p1089_p13, %p1088_p12 }
 0x23c   :  { %p1091_p1 = pnand %p1090_p0, %p1084_p11 }
 0x23e   :  { %1094 = shalt.err (!%p1091_p1)
}
 0x23f   :  { %s1095_s3 = scalar_lea.hbm %s1389_s6, 128 }
 0x240   :  { %p1096_p2 = scmp.ne.s32.totalorder %s1389_s6, %s1095_s3  ;;  %p1099_p3 = scmp.lt.u32.totalorder %s1095_s3, %s1389_s6 }
 0x242   :  { %p1101_p4 = pnand %p1099_p3, %p1096_p2 }
 0x244   :  { %1104 = shalt.err (!%p1101_p4)
}
 0x245   :  { %537 = dma.vmem_to_hbm [thread:$0]  %s535_s20, 128, %s1389_s6, [#allocation6]  }
 0x246   :  { %1127 = dma.done.wait [#allocation6], 128  }
 0x247   :  { %1128 = vsyncadd [#allocation6], 4294967168 }
 0x248   :  { %1129 = dma.done.wait [#allocation13], 128  }
 0x249   :  { %1130 = vsyncadd [#allocation13], 4294967168 }
 0x24a   :  { %554 = vsyncpa [#allocation5], 1 }
 0x24b   :  { %555 = vsyncpa [#allocation10], 1 }
 0x24c   :  { %556 = vsyncpa [#allocation6], 1 }
 0x24d   :  { %557 = vsyncpa [#allocation13], 1 }
 0x24e   :  { %558 = vsyncpa [#allocation7], 1 }
 0x24f   :  { %559 = vsyncmov [#allocation3] }
 0x252   :  { %s560_s26 = vpop.sfrf %559 }
 0x253   :  { %p648_p5 = scmp.ne.s32.totalorder %s560_s26, 0 }
 0x255   :  { %564 = shalt.err (%p648_p5)  }
 0x256   :  { %566 = vsyncmov [#allocation3 + $0x1] }
 0x259   :  { %s567_s28 = vpop.sfrf %566 }
 0x25a   :  { %p649_p6 = scmp.ne.s32.totalorder %s567_s28, 0 }
 0x25c   :  { %571 = shalt.err (%p649_p6)  }
 0x25d   :  { %573 = vsyncmov [#allocation3 + $0x2] }
 0x260   :  { %s574_s30 = vpop.sfrf %573 }
 0x261   :  { %p650_p7 = scmp.ne.s32.totalorder %s574_s30, 0 }
 0x263   :  { %578 = shalt.err (%p650_p7)  }
 0x264   :  { %580 = vsyncmov [#allocation3 + $0x3] }
 0x267   :  { %s581_s6 = vpop.sfrf %580 }
 0x268   :  { %p651_p8 = scmp.ne.s32.totalorder %s581_s6, 0 }
 0x26a   :  { %585 = shalt.err (%p651_p8)  }
 0x26b   :  { %587 = vsyncmov [#allocation3 + $0x4] }
 0x26e   :  { %s588_s8 = vpop.sfrf %587 }
 0x26f   :  { %p652_p9 = scmp.ne.s32.totalorder %s588_s8, 0 }
 0x271   :  { %592 = shalt.err (%p652_p9)  }
 0x272   :  { %594 = vsyncmov [#allocation3 + $0x5] }
 0x275   :  { %s595_s9 = vpop.sfrf %594 }
 0x276   :  { %p653_p10 = scmp.ne.s32.totalorder %s595_s9, 0 }
 0x278   :  { %599 = shalt.err (%p653_p10)  }
 0x279   :  { %601 = vsyncmov [#allocation3 + $0x6] }
 0x27c   :  { %s602_s27 = vpop.sfrf %601 }
 0x27d   :  { %p654_p11 = scmp.ne.s32.totalorder %s602_s27, 0 }
 0x27f   :  { %606 = shalt.err (%p654_p11)  }
 0x280   :  { %608 = vsyncmov [#allocation3 + $0x7] }
 0x283   :  { %s609_s1 = vpop.sfrf %608 }
 0x284   :  { %p655_p12 = scmp.ne.s32.totalorder %s609_s1, 0 }
 0x286   :  { %613 = shalt.err (%p655_p12)  }

</bundles_post_ra>
